<compile_context>
chip_gen: v7x
topology: tpu7x:2x2x1
jax: 0.10.0
libtpu: 0.0.40
codegen_flags: <defaults>
</compile_context>

<pallas_src>
import functools
import math

import jax
import jax.numpy as jnp
from jax.experimental import pallas as pl
from jax.experimental.pallas import tpu as pltpu

C_PAD = 128                    # padded channel width (lane-dense)
TILE_N = 256                   # node rows per grid step (fills MXU M dim)
ADJ_RESIDENT_BYTES = 4 * 1024 * 1024   # keep A fully in VMEM below this size


def _round_up(x, m):
    return (x + m - 1) // m * m


def _fused_sage_kernel(num_layers, tile_n, a_resident,
                       a_ref, x_ref, w_ref, b_ref,
                       xf_ref, out_ref, buf_ref):
    """grid = (layer, row_tile): one SAGEConv row-tile per grid step.

    buf_ref is a (2, N_pad, C_PAD) bf16 activation scratch: layer l writes slot
    l % 2 and layer l+1 reads it back.  Layer 0 reads directly from the resident
    X input block, so the scratch is never read uninitialized.
    """
    l = pl.program_id(0)
    r = pl.program_id(1)
    row0 = pl.multiple_of(r * tile_n, tile_n)

    # adjacency row slab for this tile (resident whole-A block or streamed slab)
    if a_resident:
        a_tile = a_ref[pl.ds(row0, tile_n), :]          # (tile_n, N_pad) bf16
    else:
        a_tile = a_ref[...]                             # (tile_n, N_pad) bf16

    w_l = w_ref[0, 0]                                   # (C_PAD, C_PAD) bf16
    w_r = w_ref[0, 1]                                   # (C_PAD, C_PAD) bf16
    bias = b_ref[0, 0:1, :]                             # (1, C_PAD) f32

    def conv_step(x_full, x_tile):
        # mean-neighbor aggregation (MXU, bf16 operands / f32 accumulate)
        agg = jnp.dot(a_tile, x_full, preferred_element_type=jnp.float32)
        # two K=128 matmuls summed in f32 (no lane-dim concat temp)
        pre = (jnp.dot(agg.astype(jnp.bfloat16), w_l,
                       preferred_element_type=jnp.float32)
               + jnp.dot(x_tile, w_r, preferred_element_type=jnp.float32)
               + bias)
        act = jnp.maximum(pre, 0.0)

        # hand the ReLU activation to the next layer (skipped after the last layer)
        @pl.when(l < num_layers - 1)
        def _():
            buf_ref[l % 2, pl.ds(row0, tile_n), :] = act.astype(jnp.bfloat16)

        # module outputs: `out` is convs[-2] pre-activation, x_final from convs[-1]
        @pl.when(l == num_layers - 2)
        def _():
            out_ref[pl.ds(row0, tile_n), :] = pre

        @pl.when(l == num_layers - 1)
        def _():
            xf_ref[pl.ds(row0, tile_n), :] = pre

    @pl.when(l == 0)
    def _():
        conv_step(x_ref[...], x_ref[pl.ds(row0, tile_n), :])

    @pl.when(l > 0)
    def _():
        read_slot = (l + 1) % 2        # == (l - 1) % 2, the slot layer l-1 wrote
        conv_step(buf_ref[read_slot],
                  buf_ref[read_slot, pl.ds(row0, tile_n), :])


def _pack_params(params, c_pad):
    """Stack per-layer (W_l, W_r, b) into lane-padded, layer-indexed tensors.

    Returns:
      w: (L, 2, c_pad, c_pad) bf16, [:, 0] = W_l (agg path), [:, 1] = W_r (root path)
      b: (L, 8, c_pad) f32 (bias broadcast over 8 sublanes, zero-padded lanes)
    """
    num_layers = len(params)
    w = jnp.zeros((num_layers, 2, c_pad, c_pad), jnp.float32)
    b = jnp.zeros((num_layers, 8, c_pad), jnp.float32)
    for i, (wl, wr, bias) in enumerate(params):
        c_in, c_out = wl.shape
        w = w.at[i, 0, :c_in, :c_out].set(wl)
        w = w.at[i, 1, :c_in, :c_out].set(wr)
        b = b.at[i, :, :c_out].set(jnp.broadcast_to(bias.reshape(1, c_out), (8, c_out)))
    return w.astype(jnp.bfloat16), b


def sage_forward(x, a_norm, params, *, tile_n=TILE_N, c_pad=C_PAD,
                 adj_resident_bytes=ADJ_RESIDENT_BYTES):
    """Mirrors SAGE.forward (eval mode). Returns (x_final, out, g)."""
    n, c_in = x.shape
    num_layers = len(params)
    assert num_layers >= 2
    hidden = params[0][0].shape[1]
    c_out = params[-1][0].shape[1]
    assert max(c_in, hidden, c_out) <= c_pad and c_pad % 128 == 0 and tile_n % 8 == 0

    # pad N so A is lane-dense (multiple of 128) and splits into whole row tiles
    n_pad = _round_up(max(n, tile_n), math.lcm(tile_n, 128))

    # NOTE: a_norm (including 1/deg) is rounded to bf16; error compounds mildly
    # across layers but stays well inside the test tolerance.
    x_p = jnp.zeros((n_pad, c_pad), jnp.bfloat16).at[:n, :c_in].set(x.astype(jnp.bfloat16))
    a_p = jnp.zeros((n_pad, n_pad), jnp.bfloat16).at[:n, :n].set(a_norm.astype(jnp.bfloat16))
    w_p, b_p = _pack_params(params, c_pad)

    a_resident = (n_pad * n_pad * 2) <= adj_resident_bytes
    if a_resident:
        a_spec = pl.BlockSpec((n_pad, n_pad), lambda l, r: (0, 0))      # fetched once
    else:
        a_spec = pl.BlockSpec((tile_n, n_pad), lambda l, r: (r, 0))     # streamed slabs

    kernel = functools.partial(_fused_sage_kernel, num_layers, tile_n, a_resident)
    grid = (num_layers, n_pad // tile_n)

    # rough resident-VMEM estimate (assume 2x pipeline buffers on pipelined blocks)
    est = ((2 if not a_resident else 2) * (n_pad * n_pad if a_resident
                                           else tile_n * n_pad) * 2      # A
           + 2 * n_pad * c_pad * 2                                       # X block
           + 2 * 2 * n_pad * c_pad * 4                                   # 2 f32 outputs
           + 2 * n_pad * c_pad * 2                                       # activation scratch
           + 2 * (2 * c_pad * c_pad * 2 + 8 * c_pad * 4))                # weights + bias
    vmem_limit = int(min(128 * 1024 * 1024, max(32 * 1024 * 1024, est * 3 // 2)))

    xf_p, out_p = pl.pallas_call(
        kernel,
        grid=grid,
        in_specs=[
            a_spec,                                                      # adjacency
            pl.BlockSpec((n_pad, c_pad), lambda l, r: (0, 0)),           # padded X (resident)
            pl.BlockSpec((1, 2, c_pad, c_pad), lambda l, r: (l, 0, 0, 0)),  # per-layer W_l/W_r
            pl.BlockSpec((1, 8, c_pad), lambda l, r: (l, 0, 0)),         # per-layer bias
        ],
        out_specs=[
            pl.BlockSpec((n_pad, c_pad), lambda l, r: (0, 0)),           # x_final (resident)
            pl.BlockSpec((n_pad, c_pad), lambda l, r: (0, 0)),           # out (resident)
        ],
        out_shape=[jax.ShapeDtypeStruct((n_pad, c_pad), jnp.float32)] * 2,
        scratch_shapes=[pltpu.VMEM((2, n_pad, c_pad), jnp.bfloat16)],
        compiler_params=pltpu.CompilerParams(
            dimension_semantics=("arbitrary", "arbitrary"),
            vmem_limit_bytes=vmem_limit),
    )(a_p, x_p, w_p, b_p)

    x_final = xf_p[:n, :c_out]
    out = out_p[:n, :hidden]
    g = jnp.maximum(out, 0.0)   # g = relu(out); dropout is identity in eval mode
    return x_final, out, g


def init_params(key, in_channels, hidden_channels, out_channels, num_layers):
    """Deterministic glorot-style init for the SAGEConv stack (synthetic weights)."""
    dims = [in_channels] + [hidden_channels] * (num_layers - 1) + [out_channels]
    params = []
    for i in range(num_layers):
        c_in, c_out = dims[i], dims[i + 1]
        key, k1, k2, k3 = jax.random.split(key, 4)
        scale = (2.0 / (c_in + c_out)) ** 0.5
        w_l = scale * jax.random.normal(k1, (c_in, c_out), dtype=jnp.float32)
        w_r = scale * jax.random.normal(k2, (c_in, c_out), dtype=jnp.float32)
        b = 0.1 * jax.random.normal(k3, (1, c_out), dtype=jnp.float32)
        params.append((w_l, w_r, b))
    return params


def sage_forward_ref(x, a_norm, params):
    """Pure-JAX reference (same bf16 operand rounding as the kernel, f32 math)."""
    bf = lambda t: t.astype(jnp.bfloat16).astype(jnp.float32)
    xx, aa = bf(x), bf(a_norm)
    out = None
    for (wl, wr, b) in params[:-1]:
        out = (aa @ xx) @ bf(wl) + xx @ bf(wr) + b
        xx = jnp.maximum(out, 0.0)
    g = xx
    wl, wr, b = params[-1]
    xf = (aa @ xx) @ bf(wl) + xx @ bf(wr) + b
    return xf, out, g


if __name__ == "__main__":
    # Small synthetic graph consistent with the module's forward().
    N = 16                 # number of nodes
    IN_CHANNELS = 16       # data.x.size(-1)
    HIDDEN = 32            # args.hidden_channels
    OUT_CHANNELS = 8       # dataset.num_classes
    NUM_LAYERS = 3
    NUM_EDGES = 64

    key = jax.random.PRNGKey(0)
    kx, ks, kd, kp = jax.random.split(key, 4)

    x = jax.random.normal(kx, (N, IN_CHANNELS), dtype=jnp.float32)

    # edge_index: row 0 = source, row 1 = target (PyG convention)
    src = jax.random.randint(ks, (NUM_EDGES,), 0, N)
    dst = jax.random.randint(kd, (NUM_EDGES,), 0, N)

    # Dense adjacency with A[target, source] = edge count; row-normalize for mean agg.
    adj = jnp.zeros((N, N), dtype=jnp.float32).at[dst, src].add(1.0)
    deg = adj.sum(axis=1, keepdims=True)
    a_norm = adj / jnp.maximum(deg, 1.0)   # isolated nodes aggregate to 0, like PyG

    params = init_params(kp, IN_CHANNELS, HIDDEN, OUT_CHANNELS, NUM_LAYERS)

    x_final, out, g = sage_forward(x, a_norm, params)
    jax.block_until_ready((x_final, out, g))

    assert x_final.shape == (N, OUT_CHANNELS)
    assert out.shape == (N, HIDDEN)
    assert g.shape == (N, HIDDEN)

    xf_r, out_r, g_r = sage_forward_ref(x, a_norm, params)
    for got, ref in ((x_final, xf_r), (out, out_r), (g, g_r)):
        assert bool(jnp.all(jnp.isfinite(got)))
        assert bool(jnp.allclose(got, ref, rtol=1e-1, atol=1e-1)), \
            float(jnp.max(jnp.abs(got - ref)))

    print("KERNEL_OK")
</pallas_src>

<mosaic_0001>
module attributes {stable_mosaic.version = 11 : i64} {
  func.func @_fused_sage_kernel(%arg0: i32, %arg1: i32, %arg2: memref<256x256xbf16, #tpu.memory_space<vmem>>, %arg3: memref<256x128xbf16, #tpu.memory_space<vmem>>, %arg4: memref<1x2x128x128xbf16, #tpu.memory_space<vmem>>, %arg5: memref<1x8x128xf32, #tpu.memory_space<vmem>>, %arg6: memref<256x128xf32, #tpu.memory_space<vmem>>, %arg7: memref<256x128xf32, #tpu.memory_space<vmem>>, %arg8: memref<2x256x128xbf16, #tpu.memory_space<vmem>>) attributes {dimension_semantics = [#tpu.dimension_semantics<arbitrary>, #tpu.dimension_semantics<arbitrary>], iteration_bounds = array<i64: 3, 1>, scalar_prefetch = 0 : i64, scratch_operands = 1 : i64, tpu.core_type = #tpu.core_type<tc>, window_params = [{pipeline_mode = #tpu.pipeline_mode<synchronous>, transform_indices = @transform_0, window_bounds = array<i64: 256, 256>}, {pipeline_mode = #tpu.pipeline_mode<synchronous>, transform_indices = @transform_1, window_bounds = array<i64: 256, 128>}, {transform_indices = @transform_2, window_bounds = array<i64: 1, 2, 128, 128>}, {transform_indices = @transform_3, window_bounds = array<i64: 1, 8, 128>}, {pipeline_mode = #tpu.pipeline_mode<synchronous>, transform_indices = @transform_4, window_bounds = array<i64: 256, 128>}, {pipeline_mode = #tpu.pipeline_mode<synchronous>, transform_indices = @transform_5, window_bounds = array<i64: 256, 128>}]} {
    %c256_i32 = arith.constant 256 : i32
    %0 = arith.muli %arg1, %c256_i32 : i32
    %1 = tpu.assume_multiple %0, 256 : i32
    %2 = arith.index_cast %1 : i32 to index
    %c0 = arith.constant 0 : index
    %3 = vector.load %arg2[%2, %c0] : memref<256x256xbf16, #tpu.memory_space<vmem>>, vector<256x256xbf16>
    %c0_0 = arith.constant 0 : index
    %c0_1 = arith.constant 0 : index
    %c0_2 = arith.constant 0 : index
    %c0_3 = arith.constant 0 : index
    %4 = vector.load %arg4[%c0_0, %c0_1, %c0_2, %c0_3] : memref<1x2x128x128xbf16, #tpu.memory_space<vmem>>, vector<1x1x128x128xbf16>
    %5 = vector.shape_cast %4 : vector<1x1x128x128xbf16> to vector<128x128xbf16>
    %c0_4 = arith.constant 0 : index
    %c1 = arith.constant 1 : index
    %c0_5 = arith.constant 0 : index
    %c0_6 = arith.constant 0 : index
    %6 = vector.load %arg4[%c0_4, %c1, %c0_5, %c0_6] : memref<1x2x128x128xbf16, #tpu.memory_space<vmem>>, vector<1x1x128x128xbf16>
    %7 = vector.shape_cast %6 : vector<1x1x128x128xbf16> to vector<128x128xbf16>
    %c0_7 = arith.constant 0 : index
    %c0_8 = arith.constant 0 : index
    %c0_9 = arith.constant 0 : index
    %8 = vector.load %arg5[%c0_7, %c0_8, %c0_9] : memref<1x8x128xf32, #tpu.memory_space<vmem>>, vector<1x1x128xf32>
    %9 = vector.shape_cast %8 : vector<1x1x128xf32> to vector<1x128xf32>
    %c0_i32 = arith.constant 0 : i32
    %10 = arith.cmpi eq, %arg0, %c0_i32 : i32
    %11 = arith.extui %10 : i1 to i32
    %c0_i32_10 = arith.constant 0 : i32
    %12 = arith.cmpi ne, %11, %c0_i32_10 : i32
    scf.if %12 {
      %c0_13 = arith.constant 0 : index
      %c0_14 = arith.constant 0 : index
      %16 = vector.load %arg3[%c0_13, %c0_14] : memref<256x128xbf16, #tpu.memory_space<vmem>>, vector<256x128xbf16>
      %17 = arith.index_cast %1 : i32 to index
      %c0_15 = arith.constant 0 : index
      %18 = vector.load %arg3[%17, %c0_15] : memref<256x128xbf16, #tpu.memory_space<vmem>>, vector<256x128xbf16>
      %cst = arith.constant dense<0.000000e+00> : vector<256x128xf32>
      %19 = tpu.matmul %3, %16, %cst {dimension_numbers = #tpu.dot_dimension_numbers<[1], [0], [0], [1], [0, 0, 1, 1], [], []>} : vector<256x256xbf16>, vector<256x128xbf16>, vector<256x128xf32> -> vector<256x128xf32>
      %20 = arith.truncf %19 : vector<256x128xf32> to vector<256x128xbf16>
      %cst_16 = arith.constant dense<0.000000e+00> : vector<256x128xf32>
      %21 = tpu.matmul %20, %5, %cst_16 {dimension_numbers = #tpu.dot_dimension_numbers<[1], [0], [0], [1], [0, 0, 1, 1], [], []>} : vector<256x128xbf16>, vector<128x128xbf16>, vector<256x128xf32> -> vector<256x128xf32>
      %cst_17 = arith.constant dense<0.000000e+00> : vector<256x128xf32>
      %22 = tpu.matmul %18, %7, %cst_17 {dimension_numbers = #tpu.dot_dimension_numbers<[1], [0], [0], [1], [0, 0, 1, 1], [], []>} : vector<256x128xbf16>, vector<128x128xbf16>, vector<256x128xf32> -> vector<256x128xf32>
      %23 = arith.addf %21, %22 : vector<256x128xf32>
      %24 = vector.broadcast %9 : vector<1x128xf32> to vector<256x128xf32>
      %25 = arith.addf %23, %24 : vector<256x128xf32>
      %cst_18 = arith.constant 0.000000e+00 : f32
      %26 = vector.broadcast %cst_18 : f32 to vector<256x128xf32>
      %27 = arith.maximumf %25, %26 : vector<256x128xf32>
      %c2_i32 = arith.constant 2 : i32
      %28 = arith.cmpi slt, %arg0, %c2_i32 : i32
      %29 = arith.extui %28 : i1 to i32
      %c0_i32_19 = arith.constant 0 : i32
      %30 = arith.cmpi ne, %29, %c0_i32_19 : i32
      scf.if %30 {
        %37 = arith.truncf %27 : vector<256x128xf32> to vector<256x128xbf16>
        %c2_i32_23 = arith.constant 2 : i32
        %c0_i32_24 = arith.constant 0 : i32
        %38 = arith.cmpi eq, %c2_i32_23, %c0_i32_24 : i32
        %c1_i32_25 = arith.constant 1 : i32
        %39 = arith.select %38, %c1_i32_25, %c2_i32_23 : i32
        %40 = arith.remsi %arg0, %39 : i32
        %c0_i32_26 = arith.constant 0 : i32
        %41 = arith.cmpi ne, %40, %c0_i32_26 : i32
        %c0_i32_27 = arith.constant 0 : i32
        %42 = arith.cmpi slt, %40, %c0_i32_27 : i32
        %c0_i32_28 = arith.constant 0 : i32
        %43 = arith.cmpi slt, %39, %c0_i32_28 : i32
        %44 = arith.xori %42, %43 : i1
        %45 = arith.andi %44, %41 : i1
        %46 = arith.addi %40, %39 : i32
        %47 = arith.select %45, %46, %40 : i32
        %48 = arith.index_cast %47 : i32 to index
        %49 = arith.index_cast %1 : i32 to index
        %c0_29 = arith.constant 0 : index
        %50 = vector.load %arg8[%48, %49, %c0_29] : memref<2x256x128xbf16, #tpu.memory_space<vmem>>, vector<1x256x128xbf16>
        %51 = vector.shape_cast %50 : vector<1x256x128xbf16> to vector<256x128xbf16>
        %52 = vector.shape_cast %37 : vector<256x128xbf16> to vector<1x256x128xbf16>
        tpu.vector_store %arg8[%48, %49, %c0_29], %52 {strides = array<i32>} : memref<2x256x128xbf16, #tpu.memory_space<vmem>>, vector<1x256x128xbf16>,
      } else {
      }
      %c1_i32 = arith.constant 1 : i32
      %31 = arith.cmpi eq, %arg0, %c1_i32 : i32
      %32 = arith.extui %31 : i1 to i32
      %c0_i32_20 = arith.constant 0 : i32
      %33 = arith.cmpi ne, %32, %c0_i32_20 : i32
      scf.if %33 {
        %37 = arith.index_cast %1 : i32 to index
        %c0_23 = arith.constant 0 : index
        %38 = vector.load %arg7[%37, %c0_23] : memref<256x128xf32, #tpu.memory_space<vmem>>, vector<256x128xf32>
        tpu.vector_store %arg7[%37, %c0_23], %25 {strides = array<i32>} : memref<256x128xf32, #tpu.memory_space<vmem>>, vector<256x128xf32>,
      } else {
      }
      %c2_i32_21 = arith.constant 2 : i32
      %34 = arith.cmpi eq, %arg0, %c2_i32_21 : i32
      %35 = arith.extui %34 : i1 to i32
      %c0_i32_22 = arith.constant 0 : i32
      %36 = arith.cmpi ne, %35, %c0_i32_22 : i32
      scf.if %36 {
        %37 = arith.index_cast %1 : i32 to index
        %c0_23 = arith.constant 0 : index
        %38 = vector.load %arg6[%37, %c0_23] : memref<256x128xf32, #tpu.memory_space<vmem>>, vector<256x128xf32>
        tpu.vector_store %arg6[%37, %c0_23], %25 {strides = array<i32>} : memref<256x128xf32, #tpu.memory_space<vmem>>, vector<256x128xf32>,
      } else {
      }
    } else {
    }
    %c0_i32_11 = arith.constant 0 : i32
    %13 = arith.cmpi sgt, %arg0, %c0_i32_11 : i32
    %14 = arith.extui %13 : i1 to i32
    %c0_i32_12 = arith.constant 0 : i32
    %15 = arith.cmpi ne, %14, %c0_i32_12 : i32
    scf.if %15 {
      %c1_i32 = arith.constant 1 : i32
      %16 = arith.addi %arg0, %c1_i32 : i32
      %c2_i32 = arith.constant 2 : i32
      %c0_i32_13 = arith.constant 0 : i32
      %17 = arith.cmpi eq, %c2_i32, %c0_i32_13 : i32
      %c1_i32_14 = arith.constant 1 : i32
      %18 = arith.select %17, %c1_i32_14, %c2_i32 : i32
      %19 = arith.remsi %16, %18 : i32
      %c0_i32_15 = arith.constant 0 : i32
      %20 = arith.cmpi ne, %19, %c0_i32_15 : i32
      %c0_i32_16 = arith.constant 0 : i32
      %21 = arith.cmpi slt, %19, %c0_i32_16 : i32
      %c0_i32_17 = arith.constant 0 : i32
      %22 = arith.cmpi slt, %18, %c0_i32_17 : i32
      %23 = arith.xori %21, %22 : i1
      %24 = arith.andi %23, %20 : i1
      %25 = arith.addi %19, %18 : i32
      %26 = arith.select %24, %25, %19 : i32
      %27 = arith.index_cast %26 : i32 to index
      %c0_18 = arith.constant 0 : index
      %c0_19 = arith.constant 0 : index
      %28 = vector.load %arg8[%27, %c0_18, %c0_19] : memref<2x256x128xbf16, #tpu.memory_space<vmem>>, vector<1x256x128xbf16>
      %29 = vector.shape_cast %28 : vector<1x256x128xbf16> to vector<256x128xbf16>
      %30 = arith.index_cast %26 : i32 to index
      %31 = arith.index_cast %1 : i32 to index
      %c0_20 = arith.constant 0 : index
      %32 = vector.load %arg8[%30, %31, %c0_20] : memref<2x256x128xbf16, #tpu.memory_space<vmem>>, vector<1x256x128xbf16>
      %33 = vector.shape_cast %32 : vector<1x256x128xbf16> to vector<256x128xbf16>
      %cst = arith.constant dense<0.000000e+00> : vector<256x128xf32>
      %34 = tpu.matmul %3, %29, %cst {dimension_numbers = #tpu.dot_dimension_numbers<[1], [0], [0], [1], [0, 0, 1, 1], [], []>} : vector<256x256xbf16>, vector<256x128xbf16>, vector<256x128xf32> -> vector<256x128xf32>
      %35 = arith.truncf %34 : vector<256x128xf32> to vector<256x128xbf16>
      %cst_21 = arith.constant dense<0.000000e+00> : vector<256x128xf32>
      %36 = tpu.matmul %35, %5, %cst_21 {dimension_numbers = #tpu.dot_dimension_numbers<[1], [0], [0], [1], [0, 0, 1, 1], [], []>} : vector<256x128xbf16>, vector<128x128xbf16>, vector<256x128xf32> -> vector<256x128xf32>
      %cst_22 = arith.constant dense<0.000000e+00> : vector<256x128xf32>
      %37 = tpu.matmul %33, %7, %cst_22 {dimension_numbers = #tpu.dot_dimension_numbers<[1], [0], [0], [1], [0, 0, 1, 1], [], []>} : vector<256x128xbf16>, vector<128x128xbf16>, vector<256x128xf32> -> vector<256x128xf32>
      %38 = arith.addf %36, %37 : vector<256x128xf32>
      %39 = vector.broadcast %9 : vector<1x128xf32> to vector<256x128xf32>
      %40 = arith.addf %38, %39 : vector<256x128xf32>
      %cst_23 = arith.constant 0.000000e+00 : f32
      %41 = vector.broadcast %cst_23 : f32 to vector<256x128xf32>
      %42 = arith.maximumf %40, %41 : vector<256x128xf32>
      %c2_i32_24 = arith.constant 2 : i32
      %43 = arith.cmpi slt, %arg0, %c2_i32_24 : i32
      %44 = arith.extui %43 : i1 to i32
      %c0_i32_25 = arith.constant 0 : i32
      %45 = arith.cmpi ne, %44, %c0_i32_25 : i32
      scf.if %45 {
        %52 = arith.truncf %42 : vector<256x128xf32> to vector<256x128xbf16>
        %c2_i32_30 = arith.constant 2 : i32
        %c0_i32_31 = arith.constant 0 : i32
        %53 = arith.cmpi eq, %c2_i32_30, %c0_i32_31 : i32
        %c1_i32_32 = arith.constant 1 : i32
        %54 = arith.select %53, %c1_i32_32, %c2_i32_30 : i32
        %55 = arith.remsi %arg0, %54 : i32
        %c0_i32_33 = arith.constant 0 : i32
        %56 = arith.cmpi ne, %55, %c0_i32_33 : i32
        %c0_i32_34 = arith.constant 0 : i32
        %57 = arith.cmpi slt, %55, %c0_i32_34 : i32
        %c0_i32_35 = arith.constant 0 : i32
        %58 = arith.cmpi slt, %54, %c0_i32_35 : i32
        %59 = arith.xori %57, %58 : i1
        %60 = arith.andi %59, %56 : i1
        %61 = arith.addi %55, %54 : i32
        %62 = arith.select %60, %61, %55 : i32
        %63 = arith.index_cast %62 : i32 to index
        %64 = arith.index_cast %1 : i32 to index
        %c0_36 = arith.constant 0 : index
        %65 = vector.load %arg8[%63, %64, %c0_36] : memref<2x256x128xbf16, #tpu.memory_space<vmem>>, vector<1x256x128xbf16>
        %66 = vector.shape_cast %65 : vector<1x256x128xbf16> to vector<256x128xbf16>
        %67 = vector.shape_cast %52 : vector<256x128xbf16> to vector<1x256x128xbf16>
        tpu.vector_store %arg8[%63, %64, %c0_36], %67 {strides = array<i32>} : memref<2x256x128xbf16, #tpu.memory_space<vmem>>, vector<1x256x128xbf16>,
      } else {
      }
      %c1_i32_26 = arith.constant 1 : i32
      %46 = arith.cmpi eq, %arg0, %c1_i32_26 : i32
      %47 = arith.extui %46 : i1 to i32
      %c0_i32_27 = arith.constant 0 : i32
      %48 = arith.cmpi ne, %47, %c0_i32_27 : i32
      scf.if %48 {
        %52 = arith.index_cast %1 : i32 to index
        %c0_30 = arith.constant 0 : index
        %53 = vector.load %arg7[%52, %c0_30] : memref<256x128xf32, #tpu.memory_space<vmem>>, vector<256x128xf32>
        tpu.vector_store %arg7[%52, %c0_30], %40 {strides = array<i32>} : memref<256x128xf32, #tpu.memory_space<vmem>>, vector<256x128xf32>,
      } else {
      }
      %c2_i32_28 = arith.constant 2 : i32
      %49 = arith.cmpi eq, %arg0, %c2_i32_28 : i32
      %50 = arith.extui %49 : i1 to i32
      %c0_i32_29 = arith.constant 0 : i32
      %51 = arith.cmpi ne, %50, %c0_i32_29 : i32
      scf.if %51 {
        %52 = arith.index_cast %1 : i32 to index
        %c0_30 = arith.constant 0 : index
        %53 = vector.load %arg6[%52, %c0_30] : memref<256x128xf32, #tpu.memory_space<vmem>>, vector<256x128xf32>
        tpu.vector_store %arg6[%52, %c0_30], %40 {strides = array<i32>} : memref<256x128xf32, #tpu.memory_space<vmem>>, vector<256x128xf32>,
      } else {
      }
    } else {
    }
    return
  }
  func.func @transform_0(%arg0: i32, %arg1: i32) -> (i32, i32) {
    %c0_i32 = arith.constant 0 : i32
    %c0_i32_0 = arith.constant 0 : i32
    %c0_i32_1 = arith.constant 0 : i32
    return %c0_i32, %c0_i32_0 : i32, i32
  }
  func.func @transform_1(%arg0: i32, %arg1: i32) -> (i32, i32) {
    %c0_i32 = arith.constant 0 : i32
    %c0_i32_0 = arith.constant 0 : i32
    %c0_i32_1 = arith.constant 0 : i32
    return %c0_i32, %c0_i32_0 : i32, i32
  }
  func.func @transform_2(%arg0: i32, %arg1: i32) -> (i32, i32, i32, i32) {
    %c0_i32 = arith.constant 0 : i32
    %c0_i32_0 = arith.constant 0 : i32
    %c0_i32_1 = arith.constant 0 : i32
    %c0_i32_2 = arith.constant 0 : i32
    return %arg0, %c0_i32, %c0_i32_0, %c0_i32_1 : i32, i32, i32, i32
  }
  func.func @transform_3(%arg0: i32, %arg1: i32) -> (i32, i32, i32) {
    %c0_i32 = arith.constant 0 : i32
    %c0_i32_0 = arith.constant 0 : i32
    %c0_i32_1 = arith.constant 0 : i32
    return %arg0, %c0_i32, %c0_i32_0 : i32, i32, i32
  }
  func.func @transform_4(%arg0: i32, %arg1: i32) -> (i32, i32) {
    %c0_i32 = arith.constant 0 : i32
    %c0_i32_0 = arith.constant 0 : i32
    %c0_i32_1 = arith.constant 0 : i32
    return %c0_i32, %c0_i32_0 : i32, i32
  }
  func.func @transform_5(%arg0: i32, %arg1: i32) -> (i32, i32) {
    %c0_i32 = arith.constant 0 : i32
    %c0_i32_0 = arith.constant 0 : i32
    %c0_i32_1 = arith.constant 0 : i32
    return %c0_i32, %c0_i32_0 : i32, i32
  }
}

</mosaic_0001>

<bundles_post_ra>
// kernel: tpu_custom_call.1
= control target key start
LH: loop header
LB: loop body
LE: loop exit
PB: predicated region body
PF: predicated region fallthrough
CT: control target
= control target key end

     0   :  { %s5093_s0 = inlined_call_operand.hbm [shape: bf16[256,256], index: 0, kind: input, shape index: {}]   ;;  %s5094_s1 = inlined_call_operand.hbm [shape: bf16[256,128], index: 1, kind: input, shape index: {}]   ;;  %s5095_s2 = inlined_call_operand.hbm [shape: bf16[3,2,128,128], index: 2, kind: input, shape index: {}]   ;;  %s5096_s3 = inlined_call_operand.hbm [shape: f32[3,8,128], index: 3, kind: input, shape index: {}]   ;;  %s5097_s4 = inlined_call_operand.hbm [shape: f32[256,128], index: 4, kind: output, shape index: {0}]   ;;  %s5098_s5 = inlined_call_operand.hbm [shape: f32[256,128], index: 5, kind: output, shape index: {1}]  }
   0x1   :  { %5209 = sst [smem:[#allocation96_spill]] %s5093_s0 }
   0x2   :  { %5210 = sst [smem:[#allocation97_spill]] %s5095_s2 }
   0x3   :  { %11 = vsyncpa [#allocation4], 0 }
   0x4   :  { %12 = vsyncpa [#allocation7], 0 }
   0x5   :  { %13 = vsyncpa [#allocation5], 0 }
   0x6   :  { %14 = vsyncpa [#allocation12], 0  ;;  %s3933_s18 = smov 0   ;;  %s3935_s19 = smov 0  }
   0x7   :  { %s3937_s20 = smov 0   ;;  %s3939_s21 = smov 0  }
   0x8   :  { %s3941_s22 = smov 0   ;;  %s3943_s23 = smov 0  }
   0x9 LB: > { %s3962_s24 = sadd.s32 4294967295, %s3889_s23   ;;  %s81_s25 = sadd.s32 1, %s3877_s20  ;;  %s3889_s23 = sphi %s3943_s23, %s20_s23   ;;  %s3885_s22 = sphi %s3941_s22, %s5435_s22   ;;  %s3881_s21 = sphi %s3939_s21, %s5434_s21   ;;  %s3877_s20 = sphi %s3937_s20, %s5433_s20   ;;  %s3873_s19 = sphi %s3935_s19, %s5432_s19   ;;  %s3869_s18 = sphi %s3933_s18, %s5431_s18  }
   0xa   : > { %p88_p0 = scmp.ne.s32.totalorder %s3877_s20, %s3873_s19  ;;  %p89_p1 = scmp.eq.s32.totalorder %s3889_s23, 0 }
   0xb   : > { %p94_p2 = scmp.ne.s32.totalorder %s3873_s19, %s3869_s18  ;;  %p5099_p3 = scmp.eq.s32.totalorder %s3962_s24, 0 }
   0xc   : > { %p90_p4 = por %p89_p1, %p88_p0  ;;  %p2753_p5 = scmp.ge.s32.totalorder %s3889_s23, 1 }
   0xd   : > { %p3973_p6 = por %p5099_p3, %p94_p2  ;;  %p173_p7 = scmp.lt.s32.totalorder %s3889_s23, 4 }
   0xe   : > { %s3891_s28 = smov [#allocation3]   ;;  %p3558_p10 = scmp.lt.s32.totalorder %s3889_s23, 3 }
   0xf   : > { %s5211_s26 = scalar_select %p3973_p6, 1, 0 }
  0x10   : > { %p3978_p8 = pnand %p2753_p5, %p173_p7  ;;  %s185_s29 = sshll.u32 %s3891_s28, 4  ;;  %s186_s29 = int_to_ptr.vmem [resolvable:$true] %s185_s29 }
  0x11   : > { %p3991_p12 = pnand %p3558_p10, %p90_p4  ;;  %s32_s7 = sadd.s32 1, %s3885_s22 }
  0x12   : > { %s5212_s27 = scalar_select %p3978_p8, 1, 0 }
  0x13   : > { %p3542_p9 = pneg %p3978_p8  ;;  %s5215_s0 = sld [smem:[#allocation96_spill]] }
  0x14   : > { %s5214_s6 = scalar_select %p3991_p12, 1, 0 }
  0x15   : > { %p3987_p11 = pnand %p3542_p9, %p5099_p3 }
  0x17   : > { %p5103_p0 = pneg %p3987_p11 }
  0x19   : > { %s3655_s10 = scalar_lea.hbm %s5215_s0, 4096 }
  0x1a   : > { %p3656_p13 = scmp.ne.s32.totalorder %s5215_s0, %s3655_s10  ;;  %p3662_p4 = scmp.lt.u32.totalorder %s3655_s10, %s5215_s0 }
  0x1c   : > { %p3658_p1 = pnand %p5103_p0, %p3656_p13 }
  0x1e   : > { %p3659_p2 = pneg %p3658_p1 }
  0x20   : > { %p3664_p5 = pnand %p3662_p4, %p3659_p2 }
  0x22   : > { %3667 = shalt.err (!%p3664_p5)
}
  0x23   : > { %s3668_s15 = scalar_lea.vmem %s186_s29, 4096  ;;  %p3676_p3 = scmp.lt.s32.totalorder %s186_s29, %s186_s29 }
  0x24   : > { %p3669_p7 = scmp.ne.s32.totalorder %s186_s29, %s3668_s15  ;;  %p3677_p6 = scmp.lt.s32.totalorder %s3668_s15, %s3668_s15 }
  0x26   : > { %p3671_p9 = pnand %p3669_p7, %p5103_p0  ;;  %p3678_p8 = por %p3677_p6, %p3676_p3 }
  0x28   : > { %p3672_p10 = pneg %p3671_p9 }
  0x2a   : > { %p3679_p12 = pnand %p3678_p8, %p3672_p10 }
  0x2c   : > { %3682 = shalt.err (!%p3679_p12)
}
  0x2d   : > { %s3892_s16 = smov 128   ;;  %s3893_s17 = smov 8  }
  0x2e   : > { %3545 = dma.hbm_to_vmem [thread:$0]  (!%p3987_p11), %s5215_s0, 4096, %s186_s29, [#allocation4], %s3892_s16, %s3892_s16, %s3893_s17  }
  0x2f   : > { %p34_p13 = scmp.ge.s32.totalorder %s32_s7, 3  ;;  %s212_s8 = sand.u32 1, %s3889_s23  }
  0x30   : > { %s214_s9 = sand.u32 1, %s3877_s20   ;;  %s2941_s12 = sshll.u32 %s3885_s22, 11 }
  0x31   : > { %s5437_s7 = smov (%p34_p13, %s32_s7), 0  ;;  %s2757_s11 = sshll.u32 %s214_s9, 7 }
  0x32   : > { %5216 = sst [smem:[#allocation18_spill]] %s5437_s7  ;;  %s78_s10 = ssub.s32 %s3885_s22, %s5437_s7 }
  0x33   : > { %p79_p3 = scmp.eq.s32.totalorder %s78_s10, 0  ;;  %s5217_s2 = sld [smem:[#allocation97_spill]] }
  0x34   : > { %s216_s16 = scalar_lea.vmem [#allocation8], %s2757_s11  ;;  %s4039_s18 = scalar_lea.sflag [#allocation4], %s212_s8 }
  0x35   : > { %s4030_s13 = scalar_select %p79_p3, %s3877_s20, %s81_s25  }
  0x36   : > { %s223_s17 = sshll.u32 %s216_s16, 4  ;;  %p5218_p8 = scmp.ne.s32.totalorder %s5214_s6, 0  ;;  %s4037_s17 = int_to_ptr.vmem [resolvable:$true] %s223_s17 }
  0x38   : > { %p5105_p12 = pneg %p5218_p8 }
  0x39   : > { %s4035_s29 = scalar_lea.hbm %s5217_s2, %s2941_s12  ;;  %s3688_s12 = scalar_lea.hbm %s5217_s2, 6144 }
  0x3a   : > { %s3683_s28 = scalar_lea.hbm %s4035_s29, 2048  ;;  %p3689_p4 = scmp.lt.u32.totalorder %s4035_s29, %s5217_s2 }
  0x3b   : > { %p3684_p6 = scmp.ne.s32.totalorder %s4035_s29, %s3683_s28  ;;  %p3690_p5 = scmp.lt.u32.totalorder %s3688_s12, %s3683_s28 }
  0x3c   : > { %p3692_p9 = scmp.lt.u32.totalorder %s3683_s28, %s4035_s29 }
  0x3d   : > { %p3686_p1 = pnand %p5105_p12, %p3684_p6  ;;  %p3691_p7 = por %p3690_p5, %p3689_p4 }
  0x3f   : > { %p3687_p2 = pneg %p3686_p1  ;;  %p3693_p10 = por %p3692_p9, %p3691_p7 }
  0x41   : > { %p3694_p13 = pnand %p3693_p10, %p3687_p2 }
  0x43   : > { %3697 = shalt.err (!%p3694_p13)
}
  0x44   : > { %s3698_s8 = scalar_lea.vmem %s4037_s17, 2048  ;;  %s3894_s11 = smov [#allocation8]  }
  0x45   : > { %p3699_p3 = scmp.ne.s32.totalorder %s4037_s17, %s3698_s8  ;;  %s3703_s16 = sshll.u32 %s3894_s11, 4  ;;  %s3704_s16 = int_to_ptr.vmem [resolvable:$false] %s3703_s16 }
  0x46   : > { %s3705_s25 = scalar_lea.vmem %s3704_s16, 4096  ;;  %p3706_p0 = scmp.lt.s32.totalorder %s4037_s17, %s3704_s16 }
  0x47   : > { %p3701_p6 = pnand %p3699_p3, %p5105_p12  ;;  %p3707_p4 = scmp.lt.s32.totalorder %s3705_s25, %s3698_s8 }
  0x49   : > { %p3702_p1 = pneg %p3701_p6  ;;  %p3708_p5 = por %p3707_p4, %p3706_p0 }
  0x4b   : > { %p3709_p7 = pnand %p3708_p5, %p3702_p1 }
  0x4d   : > { %3712 = shalt.err (!%p3709_p7)
}
  0x4e   : > { %s3895_s28 = smov 64   ;;  %s3896_s10 = smov 4  }
  0x4f   : > { %3552 = dma.hbm_to_vmem [thread:$0]  (!%p5218_p8), %s4035_s29, 2048, %s4037_s17, %s4039_s18, %s3895_s28, %s3895_s28, %s3896_s10  }
  0x50   : > { %s3897_s12 = smov [#allocation6]   ;;  %s2760_s15 = sshll.u32 %s214_s9, 3 }
  0x51   : > { %s198_s14 = sshll.u32 %s3897_s12, 4  ;;  %s3713_s16 = scalar_lea.hbm %s5094_s1, 2048  ;;  %s199_s14 = int_to_ptr.vmem [resolvable:$true] %s198_s14 }
  0x52   : > { %p3714_p0 = scmp.ne.s32.totalorder %s5094_s1, %s3713_s16  ;;  %p5219_p2 = pneg %p3987_p11 }
  0x53   : > { %p3720_p13 = scmp.lt.u32.totalorder %s3713_s16, %s5094_s1 }
  0x54   : > { %p3716_p9 = pnand %p3714_p0, %p5219_p2 }
  0x56   : > { %p3717_p10 = pneg %p3716_p9 }
  0x58   : > { %p3722_p3 = pnand %p3720_p13, %p3717_p10 }
  0x5a   : > { %3725 = shalt.err (!%p3722_p3)
}
  0x5b   : > { %s3726_s9 = scalar_lea.vmem %s199_s14, 2048  ;;  %p5220_p1 = pmov %p5219_p2 }
  0x5c   : > { %p3727_p6 = scmp.ne.s32.totalorder %s199_s14, %s3726_s9  ;;  %p3734_p7 = scmp.lt.s32.totalorder %s199_s14, %s199_s14 }
  0x5d   : > { %p3735_p12 = scmp.lt.s32.totalorder %s3726_s9, %s3726_s9 }
  0x5e   : > { %p3729_p4 = pnand %p3727_p6, %p5220_p1 }
  0x5f   : > { %p3736_p8 = por %p3735_p12, %p3734_p7 }
  0x60   : > { %p3730_p5 = pneg %p3729_p4 }
  0x62   : > { %p3737_p0 = pnand %p3736_p8, %p3730_p5 }
  0x64   : > { %3740 = shalt.err (!%p3737_p0)
}
  0x65   : > { %3548 = dma.hbm_to_vmem [thread:$0]  (!%p3987_p11), %s5094_s1, 2048, %s199_s14, [#allocation7], %s3895_s28, %s3895_s28, %s3896_s10  }
  0x66   : > { %s2761_s2 = sshll.u32 %s3885_s22, 7  ;;  %s237_s7 = scalar_lea.vmem [#allocation9], %s2760_s15 }
  0x67   : > { %s244_s17 = sshll.u32 %s237_s7, 4  ;;  %s242_s8 = scalar_lea.hbm %s5096_s3, %s2761_s2  ;;  %s245_s17 = int_to_ptr.vmem [resolvable:$true] %s244_s17 }
  0x68   : > { %s3741_s16 = scalar_lea.hbm %s242_s8, 128  ;;  %p5221_p8 = scmp.ne.s32.totalorder %s5214_s6, 0 }
  0x69   : > { %p3742_p12 = scmp.ne.s32.totalorder %s242_s8, %s3741_s16  ;;  %s3746_s9 = scalar_lea.hbm %s5096_s3, 384 }
  0x6a   : > { %p5222_p2 = pneg %p5221_p8  ;;  %p3747_p11 = scmp.lt.u32.totalorder %s242_s8, %s5096_s3 }
  0x6b   : > { %p3748_p13 = scmp.lt.u32.totalorder %s3746_s9, %s3741_s16  ;;  %p3750_p6 = scmp.lt.u32.totalorder %s3741_s16, %s242_s8 }
  0x6c   : > { %p3744_p9 = pnand %p3742_p12, %p5222_p2 }
  0x6d   : > { %p3749_p3 = por %p3748_p13, %p3747_p11 }
  0x6e   : > { %p3745_p10 = pneg %p3744_p9 }
  0x6f   : > { %p3751_p1 = por %p3750_p6, %p3749_p3 }
  0x71   : > { %p3752_p4 = pnand %p3751_p1, %p3745_p10 }
  0x73   : > { %3755 = shalt.err (!%p3752_p4)
}
  0x74   : > { %s3756_s10 = scalar_lea.vmem %s245_s17, 128  ;;  %p5223_p7 = pmov %p5222_p2 }
  0x75   : > { %p3757_p5 = scmp.ne.s32.totalorder %s245_s17, %s3756_s10  ;;  %s3898_s14 = smov [#allocation9]  }
  0x76   : > { %s3761_s15 = sshll.u32 %s3898_s14, 4  ;;  %s3762_s15 = int_to_ptr.vmem [resolvable:$false] %s3761_s15 }
  0x77   : > { %p3759_p0 = pnand %p3757_p5, %p5223_p7  ;;  %s3763_s29 = scalar_lea.vmem %s3762_s15, 256 }
  0x78   : > { %p3764_p2 = scmp.lt.s32.totalorder %s245_s17, %s3762_s15  ;;  %p3765_p9 = scmp.lt.s32.totalorder %s3763_s29, %s3756_s10 }
  0x79   : > { %p3760_p12 = pneg %p3759_p0 }
  0x7a   : > { %p3766_p11 = por %p3765_p9, %p3764_p2 }
  0x7c   : > { %p3767_p13 = pnand %p3766_p11, %p3760_p12 }
  0x7e   : > { %3770 = shalt.err (!%p3767_p13)
}
  0x7f   : > { %3555 = dma.hbm_to_vmem [thread:$0]  (!%p5221_p8), %s242_s8, 128, %s245_s17, %s4039_s18  }
  0x80   : > { %p5224_p10 = scmp.ne.s32.totalorder %s5212_s27, 0 }
  0x82   : > { %253 = sbr.rel (%p5224_p10) target bundleno = 1534 (0x5fe), region = 36 }
  0x89   : > { %p5225_p3 = scmp.eq.s32.totalorder %s3962_s24, 0 }
  0x8b   : > { %3848 = dma.done.wait (%p5225_p3), [#allocation4], 4096   ;;  %p5226_p6 = pmov %p5225_p3 }
  0x8c   : > { %p5227_p1 = pmov %p5225_p3 }
  0x8d   : > { %3850 = vsyncadd (%p5226_p6), [#allocation4], 4294963200 }
  0x8e   : > { %3852 = dma.done.wait (%p5227_p1), [#allocation7], 2048   ;;  %p5228_p4 = pmov %p5227_p1 }
  0x8f   : > { %s263_s6 = sand.u32 1, %s3962_s24   ;;  %s265_s18 = sand.u32 1, %s3873_s19  }
  0x90   : > { %3854 = vsyncadd (%p5228_p4), [#allocation7], 4294965248  ;;  %s2765_s2 = sshll.u32 %s265_s18, 7  ;;  %s264_s27 = scalar_lea.sflag [#allocation4], %s263_s6 }
  0x91   : > { %s4120_s7 = scalar_lea.vmem [#allocation8], %s2765_s2  ;;  %p5229_p8 = scmp.ne.s32.totalorder %s5211_s26, 0 }
  0x93   : > { %3856 = dma.done.wait (%p5229_p8), %s264_s27, 2176  }
  0x94   : > { %3858 = vsyncadd (%p5229_p8), %s264_s27, 4294965120  ;;  %v4126_v0 = vld [vmem:[#allocation3] sm:$0xff]  ;;  %v4128_v1 = vld [vmem:[#allocation3 + $0x8] sm:$0xff]  ;;  %s4168_s26 = sshll.u32 %s265_s18, 3  ;;  %p2783_p5 = scmp.ne.s32.totalorder %s3881_s21, 0 }
  0x95   : > { %5230 = vst [vmem:[#allocation19_spill] sm:$0xff] %v4126_v0  ;;  %5231 = vst [vmem:[#allocation20_spill] sm:$0xff] %v4128_v1  ;;  %v4130_v2 = vld [vmem:[#allocation3 + $0x10] sm:$0xff]  ;;  %v4132_v3 = vld [vmem:[#allocation3 + $0x18] sm:$0xff]  ;;  %s276_s17 = scalar_lea.vmem [#allocation9], %s4168_s26 }
  0x96   : > { %5232 = vst [vmem:[#allocation21_spill] sm:$0xff] %v4130_v2  ;;  %5233 = vst [vmem:[#allocation22_spill] sm:$0xff] %v4132_v3  ;;  %v4134_v4 = vld [vmem:[#allocation3 + $0x20] sm:$0xff]  ;;  %v4136_v5 = vld [vmem:[#allocation3 + $0x28] sm:$0xff] }
  0x97   : > { %5234 = vst [vmem:[#allocation23_spill] sm:$0xff] %v4134_v4  ;;  %5235 = vst [vmem:[#allocation24_spill] sm:$0xff] %v4136_v5  ;;  %v4138_v6 = vld [vmem:[#allocation3 + $0x30] sm:$0xff]  ;;  %v4140_v7 = vld [vmem:[#allocation3 + $0x38] sm:$0xff] }
  0x98   : > { %5236 = vst [vmem:[#allocation25_spill] sm:$0xff] %v4138_v6  ;;  %5237 = vst [vmem:[#allocation26_spill] sm:$0xff] %v4140_v7  ;;  %v4142_v8 = vld [vmem:[#allocation3 + $0x40] sm:$0xff]  ;;  %v4144_v9 = vld [vmem:[#allocation3 + $0x48] sm:$0xff] }
  0x99   : > { %5238 = vst [vmem:[#allocation27_spill] sm:$0xff] %v4142_v8  ;;  %5239 = vst [vmem:[#allocation28_spill] sm:$0xff] %v4144_v9  ;;  %v4146_v10 = vld [vmem:[#allocation3 + $0x50] sm:$0xff]  ;;  %v4148_v11 = vld [vmem:[#allocation3 + $0x58] sm:$0xff] }
  0x9a   : > { %5240 = vst [vmem:[#allocation29_spill] sm:$0xff] %v4146_v10  ;;  %5241 = vst [vmem:[#allocation30_spill] sm:$0xff] %v4148_v11  ;;  %v4150_v12 = vld [vmem:[#allocation3 + $0x60] sm:$0xff]  ;;  %v4152_v13 = vld [vmem:[#allocation3 + $0x68] sm:$0xff] }
  0x9b   : > { %5242 = vst [vmem:[#allocation31_spill] sm:$0xff] %v4150_v12  ;;  %5243 = vst [vmem:[#allocation32_spill] sm:$0xff] %v4152_v13  ;;  %v4154_v14 = vld [vmem:[#allocation3 + $0x70] sm:$0xff]  ;;  %v4156_v15 = vld [vmem:[#allocation3 + $0x78] sm:$0xff] }
  0x9c   : > { %5244 = vst [vmem:[#allocation33_spill] sm:$0xff] %v4154_v14  ;;  %5245 = vst [vmem:[#allocation34_spill] sm:$0xff] %v4156_v15  ;;  %v4158_v16 = vld [vmem:[#allocation3 + $0x80] sm:$0xff]  ;;  %v4160_v17 = vld [vmem:[#allocation3 + $0x88] sm:$0xff] }
  0x9d   : > { %5246 = vst [vmem:[#allocation35_spill] sm:$0xff] %v4158_v16  ;;  %5247 = vst [vmem:[#allocation36_spill] sm:$0xff] %v4160_v17  ;;  %v4162_v18 = vld [vmem:[#allocation3 + $0x90] sm:$0xff]  ;;  %v4164_v19 = vld [vmem:[#allocation3 + $0x98] sm:$0xff] }
  0x9e   : > { %5248 = vst [vmem:[#allocation37_spill] sm:$0xff] %v4162_v18  ;;  %5249 = vst [vmem:[#allocation38_spill] sm:$0xff] %v4164_v19  ;;  %v4166_v20 = vld [vmem:[#allocation3 + $0xa0] sm:$0xff]  ;;  %v4170_v21 = vld [vmem:[#allocation3 + $0xa8] sm:$0xff] }
  0x9f   : > { %5250 = vst [vmem:[#allocation39_spill] sm:$0xff] %v4166_v20  ;;  %5251 = vst [vmem:[#allocation40_spill] sm:$0xff] %v4170_v21  ;;  %v4172_v22 = vld [vmem:[#allocation3 + $0xb0] sm:$0xff]  ;;  %v4174_v23 = vld [vmem:[#allocation3 + $0xb8] sm:$0xff] }
  0xa0   : > { %5252 = vst [vmem:[#allocation41_spill] sm:$0xff] %v4172_v22  ;;  %5253 = vst [vmem:[#allocation42_spill] sm:$0xff] %v4174_v23  ;;  %v4176_v24 = vld [vmem:[#allocation3 + $0xc0] sm:$0xff]  ;;  %v4178_v25 = vld [vmem:[#allocation3 + $0xc8] sm:$0xff] }
  0xa1   : > { %5254 = vst [vmem:[#allocation43_spill] sm:$0xff] %v4176_v24  ;;  %5255 = vst [vmem:[#allocation44_spill] sm:$0xff] %v4178_v25  ;;  %v4180_v26 = vld [vmem:[#allocation3 + $0xd0] sm:$0xff]  ;;  %v4182_v27 = vld [vmem:[#allocation3 + $0xd8] sm:$0xff] }
  0xa2   : > { %5256 = vst [vmem:[#allocation45_spill] sm:$0xff] %v4180_v26  ;;  %5257 = vst [vmem:[#allocation46_spill] sm:$0xff] %v4182_v27  ;;  %v4184_v28 = vld [vmem:[#allocation3 + $0xe0] sm:$0xff]  ;;  %v4186_v29 = vld [vmem:[#allocation3 + $0xe8] sm:$0xff] }
  0xa3   : > { %5258 = vst [vmem:[#allocation47_spill] sm:$0xff] %v4184_v28  ;;  %5259 = vst [vmem:[#allocation48_spill] sm:$0xff] %v4186_v29  ;;  %v4188_v30 = vld [vmem:[#allocation3 + $0xf0] sm:$0xff]  ;;  %v4190_v31 = vld [vmem:[#allocation3 + $0xf8] sm:$0xff] }
  0xa4   : > { %5260 = vst [vmem:[#allocation49_spill] sm:$0xff] %v4188_v30  ;;  %5261 = vst [vmem:[#allocation50_spill] sm:$0xff] %v4190_v31  ;;  %v4193_v32 = vld [vmem:[%s4120_s7] sm:$0xf]  ;;  %v4196_v33 = vld [vmem:[%s4120_s7 + $0x4] sm:$0xf] }
  0xa5   : > { %5262 = vst [vmem:[#allocation51_spill] sm:$0xff] %v4193_v32  ;;  %5263 = vst [vmem:[#allocation52_spill] sm:$0xff] %v4196_v33  ;;  %v4199_v34 = vld [vmem:[%s4120_s7 + $0x8] sm:$0xf]  ;;  %v4202_v35 = vld [vmem:[%s4120_s7 + $0xc] sm:$0xf] }
  0xa6   : > { %5264 = vst [vmem:[#allocation53_spill] sm:$0xff] %v4199_v34  ;;  %5265 = vst [vmem:[#allocation54_spill] sm:$0xff] %v4202_v35  ;;  %v4205_v36 = vld [vmem:[%s4120_s7 + $0x10] sm:$0xf]  ;;  %v4208_v37 = vld [vmem:[%s4120_s7 + $0x14] sm:$0xf] }
  0xa7   : > { %5266 = vst [vmem:[#allocation55_spill] sm:$0xff] %v4205_v36  ;;  %5267 = vst [vmem:[#allocation56_spill] sm:$0xff] %v4208_v37  ;;  %v4211_v38 = vld [vmem:[%s4120_s7 + $0x18] sm:$0xf]  ;;  %v4214_v39 = vld [vmem:[%s4120_s7 + $0x1c] sm:$0xf] }
  0xa8   : > { %5268 = vst [vmem:[#allocation57_spill] sm:$0xff] %v4211_v38  ;;  %5269 = vst [vmem:[#allocation58_spill] sm:$0xff] %v4214_v39  ;;  %v4217_v40 = vld [vmem:[%s4120_s7 + $0x20] sm:$0xf]  ;;  %v4220_v41 = vld [vmem:[%s4120_s7 + $0x24] sm:$0xf] }
  0xa9   : > { %5270 = vst [vmem:[#allocation59_spill] sm:$0xff] %v4217_v40  ;;  %5271 = vst [vmem:[#allocation60_spill] sm:$0xff] %v4220_v41  ;;  %v4223_v42 = vld [vmem:[%s4120_s7 + $0x28] sm:$0xf]  ;;  %v4226_v43 = vld [vmem:[%s4120_s7 + $0x2c] sm:$0xf] }
  0xaa   : > { %5272 = vst [vmem:[#allocation61_spill] sm:$0xff] %v4223_v42  ;;  %5273 = vst [vmem:[#allocation62_spill] sm:$0xff] %v4226_v43  ;;  %v4229_v44 = vld [vmem:[%s4120_s7 + $0x30] sm:$0xf]  ;;  %v4232_v45 = vld [vmem:[%s4120_s7 + $0x34] sm:$0xf] }
  0xab   : > { %5274 = vst [vmem:[#allocation63_spill] sm:$0xff] %v4229_v44  ;;  %5275 = vst [vmem:[#allocation64_spill] sm:$0xff] %v4232_v45  ;;  %v4235_v46 = vld [vmem:[%s4120_s7 + $0x38] sm:$0xf]  ;;  %v4238_v47 = vld [vmem:[%s4120_s7 + $0x3c] sm:$0xf] }
  0xac   : > { %5276 = vst [vmem:[#allocation65_spill] sm:$0xff] %v4235_v46  ;;  %5277 = vst [vmem:[#allocation66_spill] sm:$0xff] %v4238_v47  ;;  %v4241_v48 = vld [vmem:[%s4120_s7 + $0x40] sm:$0xf]  ;;  %v4244_v49 = vld [vmem:[%s4120_s7 + $0x44] sm:$0xf] }
  0xad   : > { %5278 = vst [vmem:[#allocation67_spill] sm:$0xff] %v4241_v48  ;;  %5279 = vst [vmem:[#allocation68_spill] sm:$0xff] %v4244_v49  ;;  %v4247_v50 = vld [vmem:[%s4120_s7 + $0x48] sm:$0xf]  ;;  %v4250_v51 = vld [vmem:[%s4120_s7 + $0x4c] sm:$0xf] }
  0xae   : > { %5280 = vst [vmem:[#allocation69_spill] sm:$0xff] %v4247_v50  ;;  %5281 = vst [vmem:[#allocation70_spill] sm:$0xff] %v4250_v51  ;;  %v4253_v52 = vld [vmem:[%s4120_s7 + $0x50] sm:$0xf]  ;;  %v4256_v53 = vld [vmem:[%s4120_s7 + $0x54] sm:$0xf] }
  0xaf   : > { %5282 = vst [vmem:[#allocation71_spill] sm:$0xff] %v4253_v52  ;;  %5283 = vst [vmem:[#allocation72_spill] sm:$0xff] %v4256_v53  ;;  %v4259_v54 = vld [vmem:[%s4120_s7 + $0x58] sm:$0xf]  ;;  %v4262_v55 = vld [vmem:[%s4120_s7 + $0x5c] sm:$0xf] }
  0xb0   : > { %5284 = vst [vmem:[#allocation73_spill] sm:$0xff] %v4259_v54  ;;  %5285 = vst [vmem:[#allocation74_spill] sm:$0xff] %v4262_v55  ;;  %v4265_v56 = vld [vmem:[%s4120_s7 + $0x60] sm:$0xf]  ;;  %v4268_v57 = vld [vmem:[%s4120_s7 + $0x64] sm:$0xf] }
  0xb1   : > { %5286 = vst [vmem:[#allocation75_spill] sm:$0xff] %v4265_v56  ;;  %5287 = vst [vmem:[#allocation76_spill] sm:$0xff] %v4268_v57  ;;  %v4271_v58 = vld [vmem:[%s4120_s7 + $0x68] sm:$0xf]  ;;  %v4274_v59 = vld [vmem:[%s4120_s7 + $0x6c] sm:$0xf] }
  0xb2   : > { %5288 = vst [vmem:[#allocation77_spill] sm:$0xff] %v4271_v58  ;;  %5289 = vst [vmem:[#allocation78_spill] sm:$0xff] %v4274_v59  ;;  %v4277_v60 = vld [vmem:[%s4120_s7 + $0x70] sm:$0xf]  ;;  %v4280_v61 = vld [vmem:[%s4120_s7 + $0x74] sm:$0xf] }
  0xb3   : > { %5290 = vst [vmem:[#allocation79_spill] sm:$0xff] %v4277_v60  ;;  %5291 = vst [vmem:[#allocation80_spill] sm:$0xff] %v4280_v61  ;;  %v4283_v62 = vld [vmem:[%s4120_s7 + $0x78] sm:$0xf]  ;;  %v4286_v63 = vld [vmem:[%s4120_s7 + $0x7c] sm:$0xf] }
  0xb4   : > { %5292 = vst [vmem:[#allocation81_spill] sm:$0xff] %v4283_v62  ;;  %5293 = vst [vmem:[#allocation82_spill] sm:$0xff] %v4286_v63  ;;  %v4289_v30 = vld [vmem:[%s276_s17] sm:$0x1]  ;;  %379 = sbr.rel (%p2783_p5) target bundleno = 825 (0x339), region = 56 }
  0xb5   : > { %5294 = vst [vmem:[#allocation83_spill] sm:$0xff] %v4289_v30 }
  0xbb   : > { %v3623_v31 = vld [vmem:[#allocation6 + $0x40] sm:$0xff]   ;;  %v2785_v28 = vcombine.high %v4126_v0, %v4128_v1  ;;  %v3625_v46 = vld [vmem:[#allocation6 + $0x48] sm:$0xff]   ;;  %v3627_v26 = vld [vmem:[#allocation6 + $0x50] sm:$0xff]   ;;  %p2864_p7 = scmp.ge.s32.totalorder %s3881_s21, 2 }
  0xbc   : > { %v3624_v29 = vld [vmem:[#allocation6] sm:$0xff]   ;;  %2946 = vmatprep.subr.bf16.mxu0 %v3623_v31  ;;  %v3626_v47 = vld [vmem:[#allocation6 + $0x8] sm:$0xff]   ;;  %v3628_v27 = vld [vmem:[#allocation6 + $0x10] sm:$0xff]   ;;  %p1481_p0 = scmp.lt.s32.totalorder (!%p2864_p7), %s3881_s21, 0  ;;  %s1482_s12 = ssub.s32 (!%p2864_p7), 0, %s3881_s21 }
  0xbd   : > { %734 = vmatprep.mubr.bf16.mxu0 %v2785_v28  ;;  %2947 = vmatpush3.bf16.msra.mxu0 %v3624_v29  ;;  %v3629_v44 = vld [vmem:[#allocation6 + $0x58] sm:$0xff]   ;;  %v3631_v45 = vld [vmem:[#allocation6 + $0x60] sm:$0xff]   ;;  %v3633_v43 = vld [vmem:[#allocation6 + $0x68] sm:$0xff]   ;;  %s2865_s11 = smin.u32 (!%p2864_p7), %s3881_s21, %s1482_s12 }
  0xbe   : > { %2948 = vmatprep.subr.bf16.mxu0 %v3625_v46  ;;  %v3630_v30 = vld [vmem:[#allocation6 + $0x18] sm:$0xff]   ;;  %v3632_v42 = vld [vmem:[#allocation6 + $0x20] sm:$0xff]   ;;  %v3634_v24 = vld [vmem:[#allocation6 + $0x28] sm:$0xff]   ;;  %s1484_s8 = sand.u32 (!%p2864_p7), 1, %s2865_s11  }
  0xbf   : > { %v3635_v31 = vld [vmem:[#allocation6 + $0x70] sm:$0xff]   ;;  %v3637_v29 = vld [vmem:[#allocation6 + $0x78] sm:$0xff]   ;;  %s1485_s16 = ssub.s32 (!%p2864_p7), 0, %s1484_s8 }
  0xc0   : > { %v3636_v28 = vld [vmem:[#allocation6 + $0x30] sm:$0xff]   ;;  %v3638_v46 = vld [vmem:[#allocation6 + $0x38] sm:$0xff]  }
  0xc1   : > { %2949 = vmatpush3.bf16.msra.mxu0 %v3626_v47  ;;  %v2852_v47 = vcombine.low %v4265_v56, %v4268_v57 }
  0xc2   : > { %2950 = vmatprep.subr.bf16.mxu0 %v3627_v26  ;;  %v2848_v26 = vcombine.low %v4241_v48, %v4244_v49 }
  0xc4   : > { %3266 = vmatprep.subr.bf16.mxu1 %v2848_v26 }
  0xc5   : > { %2951 = vmatpush3.bf16.msra.mxu0 %v3628_v27  ;;  %v2849_v27 = vcombine.low %v4247_v50, %v4250_v51  ;;  %3267 = vmatpush3.bf16.msra.mxu1 %v2848_v26  ;;  %v2854_v26 = vcombine.low %v4277_v60, %v4280_v61 }
  0xc6   : > { %2952 = vmatprep.subr.bf16.mxu0 %v3629_v44  ;;  %v3639_v44 = vld [vmem:[#allocation6] sm:$0xff]  }
  0xc7   : > { %3282 = vmatprep.mubr.bf16.mxu1 %v3639_v44  ;;  %3268 = vmatprep.subr.bf16.mxu1 %v2849_v27  ;;  %v2855_v44 = vcombine.low %v4283_v62, %v4286_v63 }
  0xc9   : > { %2953 = vmatpush3.bf16.msra.mxu0 %v3630_v30  ;;  %v2784_v30 = vcombine.low %v4126_v0, %v4128_v1  ;;  %3269 = vmatpush3.bf16.msra.mxu1 %v2849_v27  ;;  %v2791_v27 = vcombine.high %v4138_v6, %v4140_v7 }
  0xca   : > { %2954 = vmatprep.subr.bf16.mxu0 %v3631_v45  ;;  %v2786_v45 = vcombine.low %v4130_v2, %v4132_v3 }
  0xcd   : > { %2955 = vmatpush3.bf16.msra.mxu0 %v3632_v42  ;;  %v2787_v42 = vcombine.high %v4130_v2, %v4132_v3 }
  0xce   : > { %2956 = vmatprep.subr.bf16.mxu0 %v3633_v43  ;;  %v2851_v43 = vcombine.low %v4259_v54, %v4262_v55 }
  0xd1   : > { %2957 = vmatpush3.bf16.msra.mxu0 %v3634_v24  ;;  %v2850_v24 = vcombine.low %v4253_v52, %v4256_v53 }
  0xd2   : > { %2958 = vmatprep.subr.bf16.mxu0 %v3635_v31  ;;  %v2789_v31 = vcombine.high %v4134_v4, %v4136_v5 }
  0xd3   : > { %3270 = vmatprep.subr.bf16.mxu1 %v2850_v24 }
  0xd4   : > { %3271 = vmatpush3.bf16.msra.mxu1 %v2850_v24  ;;  %v2793_v24 = vcombine.high %v4142_v8, %v4144_v9 }
  0xd5   : > { %2959 = vmatpush3.bf16.msra.mxu0 %v3636_v28  ;;  %3272 = vmatprep.subr.bf16.mxu1 %v2851_v43  ;;  %v2853_v28 = vcombine.low %v4271_v58, %v4274_v59 }
  0xd6   : > { %2960 = vmatprep.subr.bf16.mxu0 %v3637_v29  ;;  %v2788_v29 = vcombine.low %v4134_v4, %v4136_v5 }
  0xd8   : > { %3273 = vmatpush3.bf16.msra.mxu1 %v2851_v43  ;;  %v3641_v43 = vld [vmem:[#allocation6 + $0x10] sm:$0xff]  }
  0xd9   : > { %2961 = vmatpush3.bf16.msra.mxu0 %v3638_v46  ;;  %3274 = vmatprep.subr.bf16.mxu1 %v2852_v47  ;;  %v2790_v46 = vcombine.low %v4138_v6, %v4140_v7 }
  0xdc   : > { %735 = vmatmul.mubr.bf16.vlgmr.msra.gmra.mrb[0].mxu0 %v2784_v30  ;;  %3275 = vmatpush3.bf16.msra.mxu1 %v2852_v47  ;;  %v2856_v30 = vcombine.low %v4193_v32, %v4196_v33  ;;  %v2792_v47 = vcombine.low %v4142_v8, %v4144_v9 }
  0xdd   : > { %742 = vmatprep.mubr.bf16.mxu0 %v2787_v42  ;;  %3276 = vmatprep.subr.bf16.mxu1 %v2853_v28  ;;  %v3640_v42 = vld [vmem:[#allocation6 + $0x8] sm:$0xff]  }
  0xe0   : > { %3277 = vmatpush3.bf16.msra.mxu1 %v2853_v28  ;;  %v2795_v28 = vcombine.high %v4146_v10, %v4148_v11 }
  0xe1   : > { %3278 = vmatprep.subr.bf16.mxu1 %v2854_v26 }
  0xe4   : > { %743 = vmatmul.mubr.bf16.gmra.mrb[4].mxu0 %v2786_v45  ;;  %3279 = vmatpush3.bf16.msra.mxu1 %v2854_v26  ;;  %v2857_v45 = vcombine.low %v4199_v34, %v4202_v35  ;;  %v3643_v26 = vld [vmem:[#allocation6 + $0x20] sm:$0xff]  }
  0xe5   : > { %750 = vmatprep.mubr.bf16.mxu0 %v2789_v31  ;;  %3280 = vmatprep.subr.bf16.mxu1 %v2855_v44  ;;  %v2858_v31 = vcombine.low %v4205_v36, %v4208_v37 }
  0xe8   : > { %3281 = vmatpush3.bf16.msra.mxu1 %v2855_v44  ;;  %v2794_v44 = vcombine.low %v4146_v10, %v4148_v11 }
  0xe9   : > { %3314 = vmatprep.subr.bf16.mxu1 %v2856_v30 }
  0xeb   : > { %3283 = vmatmul.mubr.bf16.vlgmr.msra.gmra.mrb[0].mxu1 %v3640_v42  ;;  %v2796_v42 = vcombine.low %v4150_v12, %v4152_v13 }
  0xec   : > { %751 = vmatmul.mubr.bf16.gmra.mrb[8].mxu0 %v2788_v29  ;;  %3286 = vmatprep.mubr.bf16.mxu1 %v3641_v43  ;;  %v3642_v29 = vld [vmem:[#allocation6 + $0x18] sm:$0xff]   ;;  %v2799_v43 = vcombine.high %v4154_v14, %v4156_v15 }
  0xed   : > { %758 = vmatprep.mubr.bf16.mxu0 %v2791_v27  ;;  %3315 = vmatpush3.bf16.msra.mxu1 %v2856_v30  ;;  %v2859_v27 = vcombine.low %v4211_v38, %v4214_v39  ;;  %v3644_v30 = vld [vmem:[#allocation6 + $0x28] sm:$0xff]  }
  0xee   : > { %3316 = vmatprep.subr.bf16.mxu1 %v2857_v45 }
  0xf1   : > { %3317 = vmatpush3.bf16.msra.mxu1 %v2857_v45  ;;  %v3646_v45 = vld [vmem:[#allocation6 + $0x38] sm:$0xff]  }
  0xf2   : > { %3318 = vmatprep.subr.bf16.mxu1 %v2858_v31 }
  0xf3   : > { %3287 = vmatmul.mubr.bf16.gmra.mrb[4].mxu1 %v3642_v29  ;;  %v3648_v29 = vld [vmem:[#allocation6 + $0x48] sm:$0xff]  }
  0xf4   : > { %759 = vmatmul.mubr.bf16.gmra.mrb[12].mxu0 %v2790_v46  ;;  %3290 = vmatprep.mubr.bf16.mxu1 %v3643_v26  ;;  %v2797_v46 = vcombine.high %v4150_v12, %v4152_v13  ;;  %v3649_v26 = vld [vmem:[#allocation6 + $0x50] sm:$0xff]  }
  0xf5   : > { %766 = vmatprep.mubr.bf16.mxu0 %v2793_v24  ;;  %3319 = vmatpush3.bf16.msra.mxu1 %v2858_v31  ;;  %v3645_v24 = vld [vmem:[#allocation6 + $0x30] sm:$0xff]   ;;  %v2798_v31 = vcombine.low %v4154_v14, %v4156_v15 }
  0xf6   : > { %3320 = vmatprep.subr.bf16.mxu1 %v2859_v27 }
  0xf9   : > { %3321 = vmatpush3.bf16.msra.mxu1 %v2859_v27  ;;  %v2800_v27 = vcombine.low %v4158_v16, %v4160_v17 }
  0xfb   : > { %3291 = vmatmul.mubr.bf16.gmra.mrb[8].mxu1 %v3644_v30  ;;  %v3651_v30 = vld [vmem:[#allocation6 + $0x60] sm:$0xff]  }
  0xfc   : > { %767 = vmatmul.mubr.bf16.gmra.mrb[16].mxu0 %v2792_v47  ;;  %3294 = vmatprep.mubr.bf16.mxu1 %v3645_v24  ;;  %v3647_v47 = vld [vmem:[#allocation6 + $0x40] sm:$0xff]   ;;  %v2802_v24 = vcombine.low %v4162_v18, %v4164_v19 }
  0xfd   : > { %774 = vmatprep.mubr.bf16.mxu0 %v2795_v28  ;;  %v2801_v28 = vcombine.high %v4158_v16, %v4160_v17 }
 0x103   : > { %3295 = vmatmul.mubr.bf16.gmra.mrb[12].mxu1 %v3646_v45  ;;  %v2804_v45 = vcombine.low %v4166_v20, %v4170_v21 }
 0x104   : > { %775 = vmatmul.mubr.bf16.gmra.mrb[20].mxu0 %v2794_v44  ;;  %3298 = vmatprep.mubr.bf16.mxu1 %v3647_v47  ;;  %v2803_v44 = vcombine.high %v4162_v18, %v4164_v19  ;;  %v2807_v47 = vcombine.high %v4172_v22, %v4174_v23 }
 0x105   : > { %782 = vmatprep.mubr.bf16.mxu0 %v2797_v46  ;;  %v3650_v46 = vld [vmem:[#allocation6 + $0x58] sm:$0xff]  }
 0x10b   : > { %3299 = vmatmul.mubr.bf16.gmra.mrb[16].mxu1 %v3648_v29  ;;  %v5295_v29 = vld [vmem:[#allocation43_spill] sm:$0xff] }
 0x10c   : > { %783 = vmatmul.mubr.bf16.gmra.mrb[24].mxu0 %v2796_v42  ;;  %3302 = vmatprep.mubr.bf16.mxu1 %v3649_v26  ;;  %v2805_v42 = vcombine.high %v4166_v20, %v4170_v21  ;;  %v2809_v26 = vcombine.high %v5295_v29, %v4178_v25 }
 0x10d   : > { %790 = vmatprep.mubr.bf16.mxu0 %v2799_v43  ;;  %v3652_v43 = vld [vmem:[#allocation6 + $0x68] sm:$0xff]  }
 0x113   : > { %3303 = vmatmul.mubr.bf16.gmra.mrb[20].mxu1 %v3650_v46 }
 0x114   : > { %791 = vmatmul.mubr.bf16.gmra.mrb[28].mxu0 %v2798_v31  ;;  %3306 = vmatprep.mubr.bf16.mxu1 %v3651_v30  ;;  %v2860_v31 = vcombine.low %v4217_v40, %v4220_v41  ;;  %v3653_v30 = vld [vmem:[#allocation6 + $0x70] sm:$0xff]   ;;  %v5301_v40 = vld [vmem:[#allocation45_spill] sm:$0xff] }
 0x115   : > { %798 = vmatprep.mubr.bf16.mxu0 %v2801_v28  ;;  %v2806_v28 = vcombine.low %v4172_v22, %v4174_v23 }
 0x116   : > { %3322 = vmatprep.subr.bf16.mxu1 %v2860_v31 }
 0x117   : > { %3323 = vmatpush3.bf16.msra.mxu1 %v2860_v31  ;;  %v5300_v31 = vld [vmem:[#allocation46_spill] sm:$0xff] }
 0x118   : > { %v2811_v41 = vcombine.high %v5301_v40, %v5300_v31 }
 0x11b   : > { %3307 = vmatmul.mubr.bf16.gmra.mrb[24].mxu1 %v3652_v43  ;;  %v5299_v43 = vld [vmem:[#allocation63_spill] sm:$0xff] }
 0x11c   : > { %799 = vmatmul.mubr.bf16.gmra.mrb[32].mxu0 %v2800_v27  ;;  %v5296_v27 = vld [vmem:[#allocation62_spill] sm:$0xff]  ;;  %3310 = vmatprep.mubr.bf16.mxu1 %v3653_v30 }
 0x11d   : > { %806 = vmatprep.mubr.bf16.mxu0 %v2803_v44  ;;  %v5297_v44 = vld [vmem:[#allocation61_spill] sm:$0xff] }
 0x11e   : > { %v2861_v46 = vcombine.low %v5297_v44, %v5296_v27  ;;  %v5302_v27 = vld [vmem:[#allocation66_spill] sm:$0xff]  ;;  %v5303_v44 = vld [vmem:[#allocation65_spill] sm:$0xff] }
 0x11f   : > { %v2863_v22 = vcombine.low %v5303_v44, %v5302_v27 }
 0x120   : > { %3324 = vmatprep.subr.bf16.mxu1 %v2861_v46 }
 0x121   : > { %3325 = vmatpush3.bf16.msra.mxu1 %v2861_v46  ;;  %v5305_v46 = vld [vmem:[#allocation47_spill] sm:$0xff] }
 0x124   : > { %807 = vmatmul.mubr.bf16.gmra.mrb[36].mxu0 %v2802_v24  ;;  %v3654_v24 = vld [vmem:[#allocation6 + $0x78] sm:$0xff]  }
 0x125   : > { %814 = vmatprep.mubr.bf16.mxu0 %v2805_v42  ;;  %v5298_v42 = vld [vmem:[#allocation64_spill] sm:$0xff]  ;;  %3311 = vmatmul.mubr.bf16.gmra.mrb[28].mxu1 %v3654_v24  ;;  %v5306_v24 = vld [vmem:[#allocation50_spill] sm:$0xff] }
 0x12c   : > { %815 = vmatmul.mubr.bf16.gmra.mrb[40].mxu0 %v2804_v45  ;;  %v2862_v45 = vcombine.low %v5299_v43, %v5298_v42  ;;  %v5307_v42 = vld [vmem:[#allocation49_spill] sm:$0xff] }
 0x12d   : > { %822 = vmatprep.mubr.bf16.mxu0 %v2807_v47  ;;  %v2808_v47 = vcombine.low %v5295_v29, %v4178_v25  ;;  %v2815_v43 = vcombine.high %v5307_v42, %v5306_v24 }
 0x12e   : > { %3326 = vmatprep.subr.bf16.mxu1 %v2862_v45 }
 0x12f   : > { %3327 = vmatpush3.bf16.msra.mxu1 %v2862_v45 }
 0x130   : > { %3328 = vmatprep.subr.bf16.mxu1 %v2863_v22 }
 0x133   : > { %3329 = vmatpush3.bf16.msra.mxu1 %v2863_v22  ;;  %v2814_v22 = vcombine.low %v5307_v42, %v5306_v24 }
 0x134   : > { %823 = vmatmul.mubr.bf16.gmra.mrb[44].mxu0 %v2806_v28  ;;  %v2810_v28 = vcombine.low %v5301_v40, %v5300_v31 }
 0x135   : > { %830 = vmatprep.mubr.bf16.mxu0 %v2809_v26  ;;  %v5304_v26 = vld [vmem:[#allocation48_spill] sm:$0xff] }
 0x136   : > { %v2813_v30 = vcombine.high %v5305_v46, %v5304_v26  ;;  %v2812_v29 = vcombine.low %v5305_v46, %v5304_v26 }
 0x13c   : > { %831 = vmatmul.mubr.bf16.gmra.mrb[48].mxu0 %v2808_v47 }
 0x13d   : > { %838 = vmatprep.mubr.bf16.mxu0 %v2811_v41 }
 0x144   : > { %839 = vmatmul.mubr.bf16.gmra.mrb[52].mxu0 %v2810_v28 }
 0x145   : > { %846 = vmatprep.mubr.bf16.mxu0 %v2813_v30 }
 0x14c   : > { %847 = vmatmul.mubr.bf16.gmra.mrb[56].mxu0 %v2812_v29 }
 0x14d   : > { %854 = vmatprep.mubr.bf16.mxu0 %v2815_v43 }
 0x154   : > { %855 = vmatmul.mubr.bf16.gmra.mrb[60].mxu0 %v2814_v22 }
 0x1af   : > { %v2962_v41 = vpop.f32.mrb[0].mxu0 }
 0x1b0   : > { %v2963_v45 = vpop.f32.mrb[1].mxu0 }
 0x1b1   : > { %v2964_v40 = vadd.f32 %v2963_v45, %v2962_v41  ;;  %v2965_v47 = vpop.f32.mrb[2].mxu0 }
 0x1b2   : > { %v2966_v31 = vpop.f32.mrb[3].mxu0 }
 0x1b3   : > { %v2967_v27 = vadd.f32 %v2966_v31, %v2965_v47 }
 0x1b5   : > { %v863_v44 = vpack.c.bf16 %v2967_v27, %v2964_v40 }
 0x1b7   : > { %v2968_v28 = vpop.f32.mrb[4].mxu0  ;;  %3330 = vmatprep.mubr.bf16.mxu1 %v863_v44 }
 0x1b8   : > { %v2969_v30 = vpop.f32.mrb[5].mxu0 }
 0x1b9   : > { %v2970_v26 = vadd.f32 %v2969_v30, %v2968_v28  ;;  %v2971_v46 = vpop.f32.mrb[6].mxu0 }
 0x1ba   : > { %v2972_v25 = vpop.f32.mrb[7].mxu0 }
 0x1bb   : > { %v2973_v23 = vadd.f32 %v2972_v25, %v2971_v46 }
 0x1bd   : > { %v864_v29 = vpack.c.bf16 %v2973_v23, %v2970_v26 }
 0x1bf   : > { %v2974_v43 = vpop.f32.mrb[8].mxu0  ;;  %3331 = vmatmul.mubr.bf16.vlgmr.msra.gmra.mrb[0].mxu1 %v864_v29 }
 0x1c0   : > { %v2975_v20 = vpop.f32.mrb[9].mxu0 }
 0x1c1   : > { %v2976_v24 = vadd.f32 %v2975_v20, %v2974_v43  ;;  %v2977_v42 = vpop.f32.mrb[10].mxu0 }
 0x1c2   : > { %v2978_v22 = vpop.f32.mrb[11].mxu0 }
 0x1c3   : > { %v2979_v21 = vadd.f32 %v2978_v22, %v2977_v42 }
 0x1c5   : > { %v865_v41 = vpack.c.bf16 %v2979_v21, %v2976_v24 }
 0x1c7   : > { %v2980_v45 = vpop.f32.mrb[12].mxu0  ;;  %3334 = vmatprep.mubr.bf16.mxu1 %v865_v41 }
 0x1c8   : > { %v2981_v47 = vpop.f32.mrb[13].mxu0 }
 0x1c9   : > { %v2982_v40 = vadd.f32 %v2981_v47, %v2980_v45  ;;  %v2983_v31 = vpop.f32.mrb[14].mxu0 }
 0x1ca   : > { %v2984_v27 = vpop.f32.mrb[15].mxu0 }
 0x1cb   : > { %v2985_v44 = vadd.f32 %v2984_v27, %v2983_v31 }
 0x1cd   : > { %v866_v28 = vpack.c.bf16 %v2985_v44, %v2982_v40 }
 0x1cf   : > { %v2986_v30 = vpop.f32.mrb[16].mxu0  ;;  %3335 = vmatmul.mubr.bf16.gmra.mrb[4].mxu1 %v866_v28 }
 0x1d0   : > { %v2987_v25 = vpop.f32.mrb[17].mxu0 }
 0x1d1   : > { %v2988_v23 = vadd.f32 %v2987_v25, %v2986_v30  ;;  %v2989_v26 = vpop.f32.mrb[18].mxu0 }
 0x1d2   : > { %v2990_v46 = vpop.f32.mrb[19].mxu0 }
 0x1d3   : > { %v2991_v29 = vadd.f32 %v2990_v46, %v2989_v26 }
 0x1d5   : > { %v867_v20 = vpack.c.bf16 %v2991_v29, %v2988_v23 }
 0x1d7   : > { %v2992_v43 = vpop.f32.mrb[20].mxu0  ;;  %3338 = vmatprep.mubr.bf16.mxu1 %v867_v20 }
 0x1d8   : > { %v2993_v42 = vpop.f32.mrb[21].mxu0 }
 0x1d9   : > { %v2994_v21 = vadd.f32 %v2993_v42, %v2992_v43  ;;  %v2995_v24 = vpop.f32.mrb[22].mxu0 }
 0x1da   : > { %v2996_v22 = vpop.f32.mrb[23].mxu0 }
 0x1db   : > { %v2997_v41 = vadd.f32 %v2996_v22, %v2995_v24 }
 0x1dd   : > { %v868_v45 = vpack.c.bf16 %v2997_v41, %v2994_v21 }
 0x1df   : > { %v2998_v47 = vpop.f32.mrb[24].mxu0  ;;  %3339 = vmatmul.mubr.bf16.gmra.mrb[8].mxu1 %v868_v45 }
 0x1e0   : > { %v2999_v31 = vpop.f32.mrb[25].mxu0 }
 0x1e1   : > { %v3000_v40 = vadd.f32 %v2999_v31, %v2998_v47  ;;  %v3001_v27 = vpop.f32.mrb[26].mxu0 }
 0x1e2   : > { %v3002_v44 = vpop.f32.mrb[27].mxu0 }
 0x1e3   : > { %v3003_v28 = vadd.f32 %v3002_v44, %v3001_v27 }
 0x1e5   : > { %v869_v30 = vpack.c.bf16 %v3003_v28, %v3000_v40 }
 0x1e7   : > { %v3004_v25 = vpop.f32.mrb[28].mxu0  ;;  %3342 = vmatprep.mubr.bf16.mxu1 %v869_v30 }
 0x1e8   : > { %v3005_v26 = vpop.f32.mrb[29].mxu0 }
 0x1e9   : > { %v3006_v23 = vadd.f32 %v3005_v26, %v3004_v25  ;;  %v3007_v46 = vpop.f32.mrb[30].mxu0 }
 0x1ea   : > { %v3008_v29 = vpop.f32.mrb[31].mxu0 }
 0x1eb   : > { %v3009_v20 = vadd.f32 %v3008_v29, %v3007_v46 }
 0x1ed   : > { %v870_v43 = vpack.c.bf16 %v3009_v20, %v3006_v23 }
 0x1ef   : > { %v3010_v42 = vpop.f32.mrb[32].mxu0  ;;  %3343 = vmatmul.mubr.bf16.gmra.mrb[12].mxu1 %v870_v43 }
 0x1f0   : > { %v3011_v24 = vpop.f32.mrb[33].mxu0 }
 0x1f1   : > { %v3012_v21 = vadd.f32 %v3011_v24, %v3010_v42  ;;  %v3013_v22 = vpop.f32.mrb[34].mxu0 }
 0x1f2   : > { %v3014_v41 = vpop.f32.mrb[35].mxu0 }
 0x1f3   : > { %v3015_v45 = vadd.f32 %v3014_v41, %v3013_v22 }
 0x1f5   : > { %v871_v47 = vpack.c.bf16 %v3015_v45, %v3012_v21 }
 0x1f7   : > { %v3016_v31 = vpop.f32.mrb[36].mxu0  ;;  %3346 = vmatprep.mubr.bf16.mxu1 %v871_v47 }
 0x1f8   : > { %v3017_v27 = vpop.f32.mrb[37].mxu0 }
 0x1f9   : > { %v3018_v40 = vadd.f32 %v3017_v27, %v3016_v31  ;;  %v3019_v44 = vpop.f32.mrb[38].mxu0 }
 0x1fa   : > { %v3020_v28 = vpop.f32.mrb[39].mxu0 }
 0x1fb   : > { %v3021_v30 = vadd.f32 %v3020_v28, %v3019_v44 }
 0x1fd   : > { %v872_v25 = vpack.c.bf16 %v3021_v30, %v3018_v40 }
 0x1ff   : > { %v3022_v26 = vpop.f32.mrb[40].mxu0  ;;  %3347 = vmatmul.mubr.bf16.gmra.mrb[16].mxu1 %v872_v25 }
 0x200   : > { %v3023_v46 = vpop.f32.mrb[41].mxu0 }
 0x201   : > { %v3024_v23 = vadd.f32 %v3023_v46, %v3022_v26  ;;  %v3025_v29 = vpop.f32.mrb[42].mxu0 }
 0x202   : > { %v3026_v20 = vpop.f32.mrb[43].mxu0 }
 0x203   : > { %v3027_v43 = vadd.f32 %v3026_v20, %v3025_v29 }
 0x205   : > { %v873_v42 = vpack.c.bf16 %v3027_v43, %v3024_v23 }
 0x207   : > { %v3028_v24 = vpop.f32.mrb[44].mxu0  ;;  %3350 = vmatprep.mubr.bf16.mxu1 %v873_v42 }
 0x208   : > { %v3029_v22 = vpop.f32.mrb[45].mxu0 }
 0x209   : > { %v3030_v21 = vadd.f32 %v3029_v22, %v3028_v24  ;;  %v3031_v41 = vpop.f32.mrb[46].mxu0 }
 0x20a   : > { %v3032_v45 = vpop.f32.mrb[47].mxu0 }
 0x20b   : > { %v3033_v47 = vadd.f32 %v3032_v45, %v3031_v41 }
 0x20d   : > { %v874_v31 = vpack.c.bf16 %v3033_v47, %v3030_v21 }
 0x20f   : > { %v3034_v27 = vpop.f32.mrb[48].mxu0  ;;  %3351 = vmatmul.mubr.bf16.gmra.mrb[20].mxu1 %v874_v31 }
 0x210   : > { %v3035_v44 = vpop.f32.mrb[49].mxu0 }
 0x211   : > { %v3036_v40 = vadd.f32 %v3035_v44, %v3034_v27  ;;  %v3037_v28 = vpop.f32.mrb[50].mxu0 }
 0x212   : > { %v3038_v30 = vpop.f32.mrb[51].mxu0 }
 0x213   : > { %v3039_v25 = vadd.f32 %v3038_v30, %v3037_v28 }
 0x215   : > { %v875_v26 = vpack.c.bf16 %v3039_v25, %v3036_v40 }
 0x217   : > { %v3040_v46 = vpop.f32.mrb[52].mxu0  ;;  %3354 = vmatprep.mubr.bf16.mxu1 %v875_v26 }
 0x218   : > { %v3041_v29 = vpop.f32.mrb[53].mxu0 }
 0x219   : > { %v3042_v23 = vadd.f32 %v3041_v29, %v3040_v46  ;;  %v3043_v20 = vpop.f32.mrb[54].mxu0  ;;  %v1393_v29 = vlaneseq }
 0x21a   : > { %v3044_v43 = vpop.f32.mrb[55].mxu0 }
 0x21b   : > { %v3045_v42 = vadd.f32 %v3044_v43, %v3043_v20  ;;  %v1394_v20 = vshrl.u32 %v1393_v29, 7  ;;  %v5308_v43 = vld [vmem:[#allocation83_spill] sm:$0xff] }
 0x21d   : > { %v876_v24 = vpack.c.bf16 %v3045_v42, %v3042_v23  ;;  %v1395_v23 = vsub.s32 0, %v1394_v20 }
 0x21f   : > { %v3046_v22 = vpop.f32.mrb[56].mxu0  ;;  %3355 = vmatmul.mubr.bf16.gmra.mrb[24].mxu1 %v876_v24  ;;  %v4389_v42 = vrot.slane %v5308_v43, %v1395_v23 }
 0x220   : > { %v3047_v41 = vpop.f32.mrb[57].mxu0 }
 0x221   : > { %v3048_v21 = vadd.f32 %v3047_v41, %v3046_v22  ;;  %v3049_v45 = vpop.f32.mrb[58].mxu0 }
 0x222   : > { %v3050_v47 = vpop.f32.mrb[59].mxu0 }
 0x223   : > { %v3051_v31 = vadd.f32 %v3050_v47, %v3049_v45 }
 0x225   : > { %v877_v27 = vpack.c.bf16 %v3051_v31, %v3048_v21 }
 0x227   : > { %v3052_v44 = vpop.f32.mrb[60].mxu0  ;;  %3358 = vmatprep.mubr.bf16.mxu1 %v877_v27 }
 0x228   : > { %v3053_v28 = vpop.f32.mrb[61].mxu0 }
 0x229   : > { %v3054_v40 = vadd.f32 %v3053_v28, %v3052_v44  ;;  %v3055_v30 = vpop.f32.mrb[62].mxu0 }
 0x22a   : > { %v3056_v25 = vpop.f32.mrb[63].mxu0 }
 0x22b   : > { %v3057_v26 = vadd.f32 %v3056_v25, %v3055_v30 }
 0x22d   : > { %v878_v46 = vpack.c.bf16 %v3057_v26, %v3054_v40 }
 0x22f   : > { %3359 = vmatmul.mubr.bf16.gmra.mrb[28].mxu1 %v878_v46 }
 0x292   : > { %v3332_v24 = vpop.f32.mrb[0].mxu1 }
 0x293   : > { %v4392_v22 = vadd.f32 %v3332_v24, %v4389_v42  ;;  %v1266_v41 = vpop.f32.mrb[1].mxu1 }
 0x294   : > { %v4395_v21 = vadd.f32 %v4389_v42, %v1266_v41  ;;  %v3333_v45 = vpop.f32.mrb[2].mxu1 }
 0x295   : > { %v4399_v31 = vadd.f32 %v3333_v45, %v4389_v42  ;;  %v1269_v27 = vpop.f32.mrb[3].mxu1 }
 0x296   : > { %v4403_v28 = vadd.f32 %v4389_v42, %v1269_v27 }
 0x297   : > { %v5318_v54 = vmax.f32 (!%p2864_p7), %v4399_v31, 0.0 }
 0x2a2   : > { %v3336_v25 = vpop.f32.mrb[4].mxu1 }
 0x2a3   : > { %v4408_v26 = vadd.f32 %v3336_v25, %v4389_v42  ;;  %v1282_v46 = vpop.f32.mrb[5].mxu1 }
 0x2a4   : > { %v4411_v29 = vadd.f32 %v4389_v42, %v1282_v46  ;;  %v3337_v20 = vpop.f32.mrb[6].mxu1 }
 0x2a5   : > { %v4415_v43 = vadd.f32 %v3337_v20, %v4389_v42  ;;  %v1285_v24 = vpop.f32.mrb[7].mxu1  ;;  %v5321_v53 = vmax.f32 (!%p2864_p7), %v4408_v26, 0.0 }
 0x2a6   : > { %v4419_v45 = vadd.f32 %v4389_v42, %v1285_v24  ;;  %v5319_v2 = vmax.f32 (!%p2864_p7), %v4411_v29, 0.0 }
 0x2a7   : > { %v5322_v50 = vmax.f32 (!%p2864_p7), %v4415_v43, 0.0 }
 0x2a8   : > { %v5320_v3 = vmax.f32 (!%p2864_p7), %v4419_v45, 0.0 }
 0x2a9   : > { %v1468_v51 = vpack.c.bf16 (!%p2864_p7), %v5322_v50, %v5321_v53 }
 0x2aa   : > { %v1467_v52 = vpack.c.bf16 (!%p2864_p7), %v5320_v3, %v5319_v2 }
 0x2b2   : > { %v3340_v40 = vpop.f32.mrb[8].mxu1 }
 0x2b3   : > { %v4424_v46 = vadd.f32 %v3340_v40, %v4389_v42  ;;  %v1298_v47 = vpop.f32.mrb[9].mxu1 }
 0x2b4   : > { %v4427_v23 = vadd.f32 %v4389_v42, %v1298_v47  ;;  %v3341_v20 = vpop.f32.mrb[10].mxu1 }
 0x2b5   : > { %v4431_v41 = vadd.f32 %v3341_v20, %v4389_v42  ;;  %v1301_v24 = vpop.f32.mrb[11].mxu1  ;;  %v5325_v49 = vmax.f32 (!%p2864_p7), %v4424_v46, 0.0 }
 0x2b6   : > { %v4435_v27 = vadd.f32 %v4389_v42, %v1301_v24  ;;  %v5323_v48 = vmax.f32 (!%p2864_p7), %v4427_v23, 0.0 }
 0x2c2   : > { %v3344_v18 = vpop.f32.mrb[12].mxu1 }
 0x2c3   : > { %v4440_v47 = vadd.f32 %v3344_v18, %v4389_v42  ;;  %v1314_v19 = vpop.f32.mrb[13].mxu1 }
 0x2c4   : > { %v4443_v30 = vadd.f32 %v4389_v42, %v1314_v19  ;;  %v3345_v20 = vpop.f32.mrb[14].mxu1 }
 0x2c5   : > { %v4447_v44 = vadd.f32 %v3345_v20, %v4389_v42  ;;  %v1317_v24 = vpop.f32.mrb[15].mxu1  ;;  %v5329_v1 = vmax.f32 (!%p2864_p7), %v4440_v47, 0.0 }
 0x2c6   : > { %v4451_v25 = vadd.f32 %v4389_v42, %v1317_v24  ;;  %v5327_v0 = vmax.f32 (!%p2864_p7), %v4443_v30, 0.0 }
 0x2c7   : > { %v5330_v50 = vmax.f32 (!%p2864_p7), %v4447_v44, 0.0 }
 0x2c8   : > { %v5328_v2 = vmax.f32 (!%p2864_p7), %v4451_v25, 0.0 }
 0x2c9   : > { %v1472_v53 = vpack.c.bf16 (!%p2864_p7), %v5330_v50, %v5329_v1 }
 0x2ca   : > { %v1471_v3 = vpack.c.bf16 (!%p2864_p7), %v5328_v2, %v5327_v0 }
 0x2d2   : > { %v3348_v14 = vpop.f32.mrb[16].mxu1 }
 0x2d3   : > { %v4456_v19 = vadd.f32 %v3348_v14, %v4389_v42  ;;  %v1330_v15 = vpop.f32.mrb[17].mxu1 }
 0x2d4   : > { %v4459_v16 = vadd.f32 %v4389_v42, %v1330_v15  ;;  %v3349_v20 = vpop.f32.mrb[18].mxu1 }
 0x2d5   : > { %v1447_v12 = vmax.f32 %v4456_v19, 0.0  ;;  %v4463_v17 = vadd.f32 %v3349_v20, %v4389_v42  ;;  %v1333_v24 = vpop.f32.mrb[19].mxu1 }
 0x2d6   : > { %v1445_v13 = vmax.f32 %v4459_v16, 0.0  ;;  %v4467_v40 = vadd.f32 %v4389_v42, %v1333_v24 }
 0x2d7   : > { %v1448_v18 = vmax.f32 %v4463_v17, 0.0 }
 0x2d8   : > { %v1446_v14 = vmax.f32 %v4467_v40, 0.0 }
 0x2e2   : > { %v3352_v38 = vpop.f32.mrb[20].mxu1 }
 0x2e3   : > { %v4472_v15 = vadd.f32 %v3352_v38, %v4389_v42  ;;  %v1346_v39 = vpop.f32.mrb[21].mxu1 }
 0x2e4   : > { %v4475_v10 = vadd.f32 %v4389_v42, %v1346_v39  ;;  %v3353_v20 = vpop.f32.mrb[22].mxu1 }
 0x2e5   : > { %v1451_v11 = vmax.f32 %v4472_v15, 0.0  ;;  %v4479_v36 = vadd.f32 %v3353_v20, %v4389_v42  ;;  %v1349_v24 = vpop.f32.mrb[23].mxu1 }
 0x2e6   : > { %v1449_v37 = vmax.f32 %v4475_v10, 0.0  ;;  %v4483_v34 = vadd.f32 %v4389_v42, %v1349_v24 }
 0x2e7   : > { %v1452_v35 = vmax.f32 %v4479_v36, 0.0 }
 0x2e8   : > { %v1450_v38 = vmax.f32 %v4483_v34, 0.0 }
 0x2f2   : > { %v3356_v8 = vpop.f32.mrb[24].mxu1 }
 0x2f3   : > { %v4488_v39 = vadd.f32 %v3356_v8, %v4389_v42  ;;  %v1362_v9 = vpop.f32.mrb[25].mxu1 }
 0x2f4   : > { %v4491_v32 = vadd.f32 %v4389_v42, %v1362_v9  ;;  %v3357_v20 = vpop.f32.mrb[26].mxu1 }
 0x2f5   : > { %5309 = vst [vmem:[#allocation84_spill] sm:$0xff] %v4488_v39  ;;  %v1455_v33 = vmax.f32 %v4488_v39, 0.0  ;;  %v4495_v62 = vadd.f32 %v3357_v20, %v4389_v42  ;;  %v1365_v24 = vpop.f32.mrb[27].mxu1 }
 0x2f6   : > { %v1453_v63 = vmax.f32 %v4491_v32, 0.0  ;;  %v4499_v6 = vadd.f32 %v4389_v42, %v1365_v24 }
 0x2f7   : > { %5310 = vst [vmem:[#allocation85_spill] sm:$0xff] %v4495_v62  ;;  %v1456_v7 = vmax.f32 %v4495_v62, 0.0 }
 0x2f8   : > { %v1454_v8 = vmax.f32 %v4499_v6, 0.0 }
 0x302   : > { %v3360_v60 = vpop.f32.mrb[28].mxu1  ;;  %1464 = sbr.rel (%p2864_p7) target bundleno = 791 (0x317), region = 60 }
 0x303   : > { %v4504_v9 = vadd.f32 %v3360_v60, %v4389_v42  ;;  %v1378_v61 = vpop.f32.mrb[29].mxu1 }
 0x304   : > { %v4507_v58 = vadd.f32 %v4389_v42, %v1378_v61  ;;  %v3361_v20 = vpop.f32.mrb[30].mxu1  ;;  %v5315_v61 = vmax.f32 (!%p2864_p7), %v4395_v21, 0.0 }
 0x305   : > { %5311 = vst [vmem:[#allocation86_spill] sm:$0xff] %v4504_v9  ;;  %v1459_v59 = vmax.f32 %v4504_v9, 0.0  ;;  %v4511_v4 = vadd.f32 %v3361_v20, %v4389_v42  ;;  %v1381_v24 = vpop.f32.mrb[31].mxu1  ;;  %v1474_v9 = vpack.c.bf16 (!%p2864_p7), %v1448_v18, %v1447_v12 }
 0x306   : > { %5312 = vst [vmem:[#allocation87_spill] sm:$0xff] %v4507_v58  ;;  %v1457_v5 = vmax.f32 %v4507_v58, 0.0  ;;  %v4515_v56 = vadd.f32 %v4389_v42, %v1381_v24  ;;  %v5316_v42 = vmax.f32 (!%p2864_p7), %v4403_v28, 0.0  ;;  %v5317_v24 = vmax.f32 (!%p2864_p7), %v4392_v22, 0.0 }
 0x307   : > { %5313 = vst [vmem:[#allocation88_spill] sm:$0xff] %v4511_v4  ;;  %v1460_v57 = vmax.f32 %v4511_v4, 0.0  ;;  %v1473_v4 = vpack.c.bf16 (!%p2864_p7), %v1446_v14, %v1445_v13  ;;  %v1476_v58 = vpack.c.bf16 (!%p2864_p7), %v1452_v35, %v1451_v11 }
 0x308   : > { %5314 = vst [vmem:[#allocation89_spill] sm:$0xff] %v4515_v56  ;;  %v1458_v60 = vmax.f32 %v4515_v56, 0.0  ;;  %v1465_v20 = vpack.c.bf16 (!%p2864_p7), %v5316_v42, %v5315_v61  ;;  %v1466_v55 = vpack.c.bf16 (!%p2864_p7), %v5318_v54, %v5317_v24  ;;  %v5324_v61 = vmax.f32 (!%p2864_p7), %v4435_v27, 0.0 }
 0x309   : > { %s5439_s16 = smov (!%p1481_p0, %s1485_s16), %s1484_s8  ;;  %v5326_v54 = vmax.f32 %v4431_v41, 0.0  ;;  %v1475_v56 = vpack.c.bf16 %v1450_v38, %v1449_v37  ;;  %v1480_v39 = vpack.c.bf16 %v1460_v57, %v1459_v59 }
 0x30a   : > { %p2867_p12 = scmp.lt.s32.totalorder %s5439_s16, 0  ;;  %s1491_s30 = sadd.s32 2, %s5439_s16  ;;  %v1469_v42 = vpack.c.bf16 %v5324_v61, %v5323_v48  ;;  %v1477_v48 = vpack.c.bf16 %v1454_v8, %v1453_v63  ;;  %v1478_v61 = vpack.c.bf16 %v1456_v7, %v1455_v33  ;;  %v1479_v62 = vpack.c.bf16 %v1458_v60, %v1457_v5 }
 0x30b   : > { %v1470_v24 = vpack.c.bf16 %v5326_v54, %v5325_v49 }
 0x30c   : > { %s5441_s30 = smov (!%p2867_p12, %s1491_s30), %s5439_s16 }
 0x30d   : > { %s2942_s25 = sshll.u32 %s5441_s30, 7 }
 0x30e   : > { %s1498_s9 = scalar_lea.vmem [#allocation2], %s2942_s25 }
 0x30f   : > { %1499 = vst [vmem:[%s1498_s9] sm:$0xff] %v1465_v20  ;;  %1500 = vst [vmem:[%s1498_s9 + $0x8] sm:$0xff] %v1466_v55 }
 0x310   : > { %1501 = vst [vmem:[%s1498_s9 + $0x10] sm:$0xff] %v1467_v52  ;;  %1502 = vst [vmem:[%s1498_s9 + $0x18] sm:$0xff] %v1468_v51 }
 0x311   : > { %1503 = vst [vmem:[%s1498_s9 + $0x20] sm:$0xff] %v1469_v42  ;;  %1504 = vst [vmem:[%s1498_s9 + $0x28] sm:$0xff] %v1470_v24 }
 0x312   : > { %1505 = vst [vmem:[%s1498_s9 + $0x30] sm:$0xff] %v1471_v3  ;;  %1506 = vst [vmem:[%s1498_s9 + $0x38] sm:$0xff] %v1472_v53 }
 0x313   : > { %1507 = vst [vmem:[%s1498_s9 + $0x40] sm:$0xff] %v1473_v4  ;;  %1508 = vst [vmem:[%s1498_s9 + $0x48] sm:$0xff] %v1474_v9 }
 0x314   : > { %1509 = vst [vmem:[%s1498_s9 + $0x50] sm:$0xff] %v1475_v56  ;;  %1510 = vst [vmem:[%s1498_s9 + $0x58] sm:$0xff] %v1476_v58 }
 0x315   : > { %1511 = vst [vmem:[%s1498_s9 + $0x60] sm:$0xff] %v1477_v48  ;;  %1512 = vst [vmem:[%s1498_s9 + $0x68] sm:$0xff] %v1478_v61 }
 0x316   : > { %1513 = vst [vmem:[%s1498_s9 + $0x70] sm:$0xff] %v1479_v62  ;;  %1514 = vst [vmem:[%s1498_s9 + $0x78] sm:$0xff] %v1480_v39 }
 0x317 PF: > { %p2870_p2 = scmp.ne.s32.totalorder %s3881_s21, 1 }
 0x318   : > { %1520 = vst [vmem:[#allocation11] sm:$0xff] (!%p2870_p2), %v4395_v21  ;;  %1521 = vst [vmem:[#allocation11 + $0x8] sm:$0xff] (!%p2870_p2), %v4403_v28  ;;  %v5331_v0 = vld [vmem:[#allocation84_spill] sm:$0xff] (!%p2870_p2)  ;;  %v5332_v1 = vld [vmem:[#allocation85_spill] sm:$0xff] (!%p2870_p2) }
 0x319   : > { %1518 = sbr.rel (%p2870_p2) target bundleno = 808 (0x328), region = 64  ;;  %1522 = vst [vmem:[#allocation11 + $0x10] sm:$0xff] (!%p2870_p2), %v4392_v22  ;;  %1523 = vst [vmem:[#allocation11 + $0x18] sm:$0xff] (!%p2870_p2), %v4399_v31 }
 0x31a   : > { %1524 = vst [vmem:[#allocation11 + $0x20] sm:$0xff] (!%p2870_p2), %v4411_v29  ;;  %1525 = vst [vmem:[#allocation11 + $0x28] sm:$0xff] (!%p2870_p2), %v4419_v45  ;;  %v5335_v7 = vld [vmem:[#allocation86_spill] sm:$0xff] (!%p2870_p2) }
 0x31b   : > { %1526 = vst [vmem:[#allocation11 + $0x30] sm:$0xff] (!%p2870_p2), %v4408_v26  ;;  %1527 = vst [vmem:[#allocation11 + $0x38] sm:$0xff] (!%p2870_p2), %v4415_v43  ;;  %v5333_v4 = vld [vmem:[#allocation87_spill] sm:$0xff] (!%p2870_p2) }
 0x31c   : > { %1528 = vst [vmem:[#allocation11 + $0x40] sm:$0xff] (!%p2870_p2), %v4427_v23  ;;  %1529 = vst [vmem:[#allocation11 + $0x48] sm:$0xff] (!%p2870_p2), %v4435_v27  ;;  %v5336_v11 = vld [vmem:[#allocation88_spill] sm:$0xff] (!%p2870_p2) }
 0x31d   : > { %1530 = vst [vmem:[#allocation11 + $0x50] sm:$0xff] (!%p2870_p2), %v4424_v46  ;;  %1531 = vst [vmem:[#allocation11 + $0x58] sm:$0xff] (!%p2870_p2), %v4431_v41  ;;  %v5334_v5 = vld [vmem:[#allocation89_spill] sm:$0xff] (!%p2870_p2) }
 0x31e   : > { %1532 = vst [vmem:[#allocation11 + $0x60] sm:$0xff] (!%p2870_p2), %v4443_v30  ;;  %1533 = vst [vmem:[#allocation11 + $0x68] sm:$0xff] (!%p2870_p2), %v4451_v25 }
 0x31f   : > { %1534 = vst [vmem:[#allocation11 + $0x70] sm:$0xff] (!%p2870_p2), %v4440_v47  ;;  %1535 = vst [vmem:[#allocation11 + $0x78] sm:$0xff] (!%p2870_p2), %v4447_v44 }
 0x320   : > { %1536 = vst [vmem:[#allocation11 + $0x80] sm:$0xff] %v4459_v16  ;;  %1537 = vst [vmem:[#allocation11 + $0x88] sm:$0xff] %v4467_v40 }
 0x321   : > { %1538 = vst [vmem:[#allocation11 + $0x90] sm:$0xff] %v4456_v19  ;;  %1539 = vst [vmem:[#allocation11 + $0x98] sm:$0xff] %v4463_v17 }
 0x322   : > { %1540 = vst [vmem:[#allocation11 + $0xa0] sm:$0xff] %v4475_v10  ;;  %1541 = vst [vmem:[#allocation11 + $0xa8] sm:$0xff] %v4483_v34 }
 0x323   : > { %1542 = vst [vmem:[#allocation11 + $0xb0] sm:$0xff] %v4472_v15  ;;  %1543 = vst [vmem:[#allocation11 + $0xb8] sm:$0xff] %v4479_v36 }
 0x324   : > { %1544 = vst [vmem:[#allocation11 + $0xc0] sm:$0xff] %v4491_v32  ;;  %1545 = vst [vmem:[#allocation11 + $0xc8] sm:$0xff] %v4499_v6 }
 0x325   : > { %1546 = vst [vmem:[#allocation11 + $0xd0] sm:$0xff] %v5331_v0  ;;  %1547 = vst [vmem:[#allocation11 + $0xd8] sm:$0xff] %v5332_v1 }
 0x326   : > { %1548 = vst [vmem:[#allocation11 + $0xe0] sm:$0xff] %v5333_v4  ;;  %1549 = vst [vmem:[#allocation11 + $0xe8] sm:$0xff] %v5334_v5 }
 0x327   : > { %1550 = vst [vmem:[#allocation11 + $0xf0] sm:$0xff] %v5335_v7  ;;  %1551 = vst [vmem:[#allocation11 + $0xf8] sm:$0xff] %v5336_v11 }
 0x328 PF: > { %p2871_p9 = scmp.ne.s32.totalorder %s3881_s21, 2 }
 0x329   : > { %1557 = vst [vmem:[#allocation10] sm:$0xff] (!%p2871_p9), %v4395_v21  ;;  %1558 = vst [vmem:[#allocation10 + $0x8] sm:$0xff] (!%p2871_p9), %v4403_v28  ;;  %v5337_v12 = vld [vmem:[#allocation84_spill] sm:$0xff] (!%p2871_p9)  ;;  %v5338_v13 = vld [vmem:[#allocation85_spill] sm:$0xff] (!%p2871_p9) }
 0x32a   : > { %1555 = sbr.rel (%p2871_p9) target bundleno = 825 (0x339), region = 68  ;;  %1559 = vst [vmem:[#allocation10 + $0x10] sm:$0xff] (!%p2871_p9), %v4392_v22  ;;  %1560 = vst [vmem:[#allocation10 + $0x18] sm:$0xff] (!%p2871_p9), %v4399_v31  ;;  %v5340_v33 = vld [vmem:[#allocation89_spill] sm:$0xff] (!%p2871_p9) }
 0x32b   : > { %1561 = vst [vmem:[#allocation10 + $0x20] sm:$0xff] (!%p2871_p9), %v4411_v29  ;;  %1562 = vst [vmem:[#allocation10 + $0x28] sm:$0xff] (!%p2871_p9), %v4419_v45 }
 0x32c   : > { %1563 = vst [vmem:[#allocation10 + $0x30] sm:$0xff] (!%p2871_p9), %v4408_v26  ;;  %1564 = vst [vmem:[#allocation10 + $0x38] sm:$0xff] (!%p2871_p9), %v4415_v43 }
 0x32d   : > { %1565 = vst [vmem:[#allocation10 + $0x40] sm:$0xff] (!%p2871_p9), %v4427_v23  ;;  %1566 = vst [vmem:[#allocation10 + $0x48] sm:$0xff] (!%p2871_p9), %v4435_v27 }
 0x32e   : > { %1567 = vst [vmem:[#allocation10 + $0x50] sm:$0xff] (!%p2871_p9), %v4424_v46  ;;  %1568 = vst [vmem:[#allocation10 + $0x58] sm:$0xff] (!%p2871_p9), %v4431_v41 }
 0x32f   : > { %1569 = vst [vmem:[#allocation10 + $0x60] sm:$0xff] (!%p2871_p9), %v4443_v30  ;;  %1570 = vst [vmem:[#allocation10 + $0x68] sm:$0xff] (!%p2871_p9), %v4451_v25 }
 0x330   : > { %1571 = vst [vmem:[#allocation10 + $0x70] sm:$0xff] (!%p2871_p9), %v4440_v47  ;;  %1572 = vst [vmem:[#allocation10 + $0x78] sm:$0xff] (!%p2871_p9), %v4447_v44 }
 0x331   : > { %1573 = vst [vmem:[#allocation10 + $0x80] sm:$0xff] %v4459_v16  ;;  %1574 = vst [vmem:[#allocation10 + $0x88] sm:$0xff] %v4467_v40  ;;  %v5339_v16 = vld [vmem:[#allocation87_spill] sm:$0xff] }
 0x332   : > { %1575 = vst [vmem:[#allocation10 + $0x90] sm:$0xff] %v4456_v19  ;;  %1576 = vst [vmem:[#allocation10 + $0x98] sm:$0xff] %v4463_v17  ;;  %v5341_v17 = vld [vmem:[#allocation86_spill] sm:$0xff] }
 0x333   : > { %1577 = vst [vmem:[#allocation10 + $0xa0] sm:$0xff] %v4475_v10  ;;  %1578 = vst [vmem:[#allocation10 + $0xa8] sm:$0xff] %v4483_v34  ;;  %v5342_v10 = vld [vmem:[#allocation88_spill] sm:$0xff] }
 0x334   : > { %1579 = vst [vmem:[#allocation10 + $0xb0] sm:$0xff] %v4472_v15  ;;  %1580 = vst [vmem:[#allocation10 + $0xb8] sm:$0xff] %v4479_v36 }
 0x335   : > { %1581 = vst [vmem:[#allocation10 + $0xc0] sm:$0xff] %v4491_v32  ;;  %1582 = vst [vmem:[#allocation10 + $0xc8] sm:$0xff] %v4499_v6 }
 0x336   : > { %1583 = vst [vmem:[#allocation10 + $0xd0] sm:$0xff] %v5337_v12  ;;  %1584 = vst [vmem:[#allocation10 + $0xd8] sm:$0xff] %v5338_v13 }
 0x337   : > { %1585 = vst [vmem:[#allocation10 + $0xe0] sm:$0xff] %v5339_v16  ;;  %1586 = vst [vmem:[#allocation10 + $0xe8] sm:$0xff] %v5340_v33 }
 0x338   : > { %1587 = vst [vmem:[#allocation10 + $0xf0] sm:$0xff] %v5341_v17  ;;  %1588 = vst [vmem:[#allocation10 + $0xf8] sm:$0xff] %v5342_v10 }
 0x339 PF: > { %p2872_p11 = scmp.le.s32.totalorder %s3881_s21, 0 }
 0x33b   : > { %1592 = sbr.rel (%p2872_p11) target bundleno = 1483 (0x5cb), region = 72 }
 0x342   : > { %s1593_s0 = sadd.s32 1, %s3881_s21  ;;  %v5343_v6 = vld [vmem:[#allocation20_spill] sm:$0xff]  ;;  %v5344_v32 = vld [vmem:[#allocation19_spill] sm:$0xff]  ;;  %v5347_v30 = vld [vmem:[#allocation70_spill] sm:$0xff]  ;;  %p2927_p3 = scmp.ge.s32.totalorder %s3881_s21, 2 }
 0x343   : > { %v2880_v34 = vcombine.high %v5344_v32, %v5343_v6  ;;  %p1594_p13 = scmp.lt.s32.totalorder %s1593_s0, 0  ;;  %s1595_s28 = ssub.s32 0, %s1593_s0  ;;  %v5345_v31 = vld [vmem:[#allocation68_spill] sm:$0xff]  ;;  %v5346_v44 = vld [vmem:[#allocation67_spill] sm:$0xff]  ;;  %v5348_v26 = vld [vmem:[#allocation69_spill] sm:$0xff]  ;;  %v2879_v43 = vcombine.low %v5344_v32, %v5343_v6 }
 0x344   : > { %s2873_s10 = smin.u32 %s1595_s28, %s1593_s0  ;;  %v2911_v28 = vcombine.low %v5346_v44, %v5345_v31  ;;  %v2912_v29 = vcombine.low %v5348_v26, %v5347_v30  ;;  %v5349_v41 = vld [vmem:[#allocation72_spill] sm:$0xff]  ;;  %v5350_v45 = vld [vmem:[#allocation71_spill] sm:$0xff]  ;;  %v5351_v25 = vld [vmem:[#allocation22_spill] sm:$0xff]  ;;  %p2489_p6 = scmp.lt.s32.totalorder (!%p2927_p3), %s3881_s21, 0 }
 0x345   : > { %1838 = vmatprep.mubr.bf16.mxu0 %v2880_v34  ;;  %s1597_s14 = sand.u32 1, %s2873_s10   ;;  %v2913_v27 = vcombine.low %v5350_v45, %v5349_v41  ;;  %v5352_v46 = vld [vmem:[#allocation21_spill] sm:$0xff]  ;;  %v5353_v47 = vld [vmem:[#allocation74_spill] sm:$0xff]  ;;  %v5355_v15 = vld [vmem:[#allocation76_spill] sm:$0xff]  ;;  %s2490_s2 = ssub.s32 (!%p2927_p3), 0, %s3881_s21 }
 0x346   : > { %s1598_s15 = ssub.s32 0, %s1597_s14  ;;  %3362 = vmatprep.subr.bf16.mxu1 %v2911_v28  ;;  %v2882_v40 = vcombine.high %v5352_v46, %v5351_v25  ;;  %v5354_v18 = vld [vmem:[#allocation73_spill] sm:$0xff]  ;;  %v2881_v14 = vcombine.low %v5352_v46, %v5351_v25  ;;  %v5356_v38 = vld [vmem:[#allocation75_spill] sm:$0xff]  ;;  %v5357_v8 = vld [vmem:[#allocation24_spill] sm:$0xff]  ;;  %s2928_s27 = smin.u32 (!%p2927_p3), %s3881_s21, %s2490_s2 }
 0x347   : > { %s5443_s15 = smov (!%p1594_p13, %s1598_s15), %s1597_s14  ;;  %3363 = vmatpush3.bf16.msra.mxu1 %v2911_v28  ;;  %v2914_v19 = vcombine.low %v5354_v18, %v5353_v47  ;;  %v2915_v39 = vcombine.low %v5356_v38, %v5355_v15  ;;  %v5358_v9 = vld [vmem:[#allocation23_spill] sm:$0xff]  ;;  %v5359_v20 = vld [vmem:[#allocation78_spill] sm:$0xff]  ;;  %v5360_v42 = vld [vmem:[#allocation77_spill] sm:$0xff]  ;;  %s2492_s7 = sand.u32 (!%p2927_p3), 1, %s2928_s27  }
 0x348   : > { %p2875_p10 = scmp.lt.s32.totalorder %s5443_s15, 0  ;;  %s1604_s29 = sadd.s32 2, %s5443_s15  ;;  %3364 = vmatprep.subr.bf16.mxu1 %v2912_v29  ;;  %v2884_v60 = vcombine.high %v5358_v9, %v5357_v8  ;;  %v2916_v54 = vcombine.low %v5360_v42, %v5359_v20  ;;  %v2883_v24 = vcombine.low %v5358_v9, %v5357_v8  ;;  %v5361_v2 = vld [vmem:[#allocation80_spill] sm:$0xff]  ;;  %v5362_v3 = vld [vmem:[#allocation79_spill] sm:$0xff]  ;;  %v5363_v53 = vld [vmem:[#allocation26_spill] sm:$0xff] }
 0x349   : > { %v2917_v50 = vcombine.low %v5362_v3, %v5361_v2  ;;  %v5364_v48 = vld [vmem:[#allocation25_spill] sm:$0xff]  ;;  %v5365_v0 = vld [vmem:[#allocation82_spill] sm:$0xff]  ;;  %v5367_v7 = vld [vmem:[#allocation52_spill] sm:$0xff]  ;;  %s2493_s26 = ssub.s32 (!%p2927_p3), 0, %s2492_s7 }
 0x34a   : > { %s5445_s29 = smov (!%p2875_p10, %s1604_s29), %s5443_s15  ;;  %v2886_v61 = vcombine.high %v5364_v48, %v5363_v53  ;;  %v5366_v1 = vld [vmem:[#allocation81_spill] sm:$0xff]  ;;  %v2885_v5 = vcombine.low %v5364_v48, %v5363_v53  ;;  %v5368_v11 = vld [vmem:[#allocation51_spill] sm:$0xff]  ;;  %v5369_v13 = vld [vmem:[#allocation28_spill] sm:$0xff] }
 0x34b   : > { %s2943_s6 = sshll.u32 %s5445_s29, 7  ;;  %3365 = vmatpush3.bf16.msra.mxu1 %v2912_v29  ;;  %v2918_v4 = vcombine.low %v5366_v1, %v5365_v0  ;;  %v2919_v12 = vcombine.low %v5368_v11, %v5367_v7  ;;  %v5370_v16 = vld [vmem:[#allocation27_spill] sm:$0xff]  ;;  %v5371_v17 = vld [vmem:[#allocation54_spill] sm:$0xff]  ;;  %v5372_v10 = vld [vmem:[#allocation53_spill] sm:$0xff] }
 0x34c   : > { %s4625_s18 = scalar_lea.vmem [#allocation2], %s2943_s6  ;;  %3366 = vmatprep.subr.bf16.mxu1 %v2913_v27  ;;  %v2888_v33 = vcombine.high %v5370_v16, %v5369_v13  ;;  %v2920_v6 = vcombine.low %v5372_v10, %v5371_v17  ;;  %v2887_v32 = vcombine.low %v5370_v16, %v5369_v13  ;;  %v5373_v34 = vld [vmem:[#allocation56_spill] sm:$0xff]  ;;  %v5375_v44 = vld [vmem:[#allocation30_spill] sm:$0xff]  ;;  %v5376_v28 = vld [vmem:[#allocation29_spill] sm:$0xff] }
 0x34d   : > { %v4628_v35 = vld [vmem:[%s4625_s18 + $0x40] sm:$0xff]  ;;  %v4632_v37 = vld [vmem:[%s4625_s18 + $0x48] sm:$0xff]  ;;  %v4640_v51 = vld [vmem:[%s4625_s18 + $0x50] sm:$0xff]  ;;  %v2890_v30 = vcombine.high %v5376_v28, %v5375_v44 }
 0x34e   : > { %v1609_v36 = vld [vmem:[%s4625_s18] sm:$0xff]  ;;  %3106 = vmatprep.subr.bf16.mxu0 %v4628_v35  ;;  %v4637_v49 = vld [vmem:[%s4625_s18 + $0x8] sm:$0xff]  ;;  %v4645_v52 = vld [vmem:[%s4625_s18 + $0x10] sm:$0xff] }
 0x34f   : > { %3378 = vmatprep.mubr.bf16.mxu1 %v1609_v36  ;;  %3107 = vmatpush3.bf16.msra.mxu0 %v1609_v36  ;;  %v4648_v55 = vld [vmem:[%s4625_s18 + $0x58] sm:$0xff]  ;;  %v4656_v57 = vld [vmem:[%s4625_s18 + $0x60] sm:$0xff]  ;;  %v4664_v59 = vld [vmem:[%s4625_s18 + $0x68] sm:$0xff] }
 0x350   : > { %3108 = vmatprep.subr.bf16.mxu0 %v4632_v37  ;;  %v4653_v56 = vld [vmem:[%s4625_s18 + $0x18] sm:$0xff]  ;;  %v4661_v58 = vld [vmem:[%s4625_s18 + $0x20] sm:$0xff]  ;;  %v4669_v62 = vld [vmem:[%s4625_s18 + $0x28] sm:$0xff]  ;;  %3367 = vmatpush3.bf16.msra.mxu1 %v2913_v27 }
 0x351   : > { %v4672_v63 = vld [vmem:[%s4625_s18 + $0x70] sm:$0xff]  ;;  %v4680_v21 = vld [vmem:[%s4625_s18 + $0x78] sm:$0xff]  ;;  %3368 = vmatprep.subr.bf16.mxu1 %v2914_v19  ;;  %v5377_v26 = vld [vmem:[#allocation58_spill] sm:$0xff] }
 0x352   : > { %v4677_v22 = vld [vmem:[%s4625_s18 + $0x30] sm:$0xff]  ;;  %v4689_v23 = vld [vmem:[%s4625_s18 + $0x38] sm:$0xff]  ;;  %v5378_v29 = vld [vmem:[#allocation57_spill] sm:$0xff] }
 0x353   : > { %3109 = vmatpush3.bf16.msra.mxu0 %v4637_v49  ;;  %v5374_v36 = vld [vmem:[#allocation55_spill] sm:$0xff]  ;;  %v5381_v27 = vld [vmem:[#allocation34_spill] sm:$0xff]  ;;  %v5397_v2 = vld [vmem:[#allocation64_spill] sm:$0xff] }
 0x354   : > { %3110 = vmatprep.subr.bf16.mxu0 %v4640_v51  ;;  %3369 = vmatpush3.bf16.msra.mxu1 %v2914_v19  ;;  %v2921_v31 = vcombine.low %v5374_v36, %v5373_v34  ;;  %v5380_v41 = vld [vmem:[#allocation31_spill] sm:$0xff]  ;;  %v5385_v18 = vld [vmem:[#allocation38_spill] sm:$0xff]  ;;  %v5386_v19 = vld [vmem:[#allocation37_spill] sm:$0xff] }
 0x355   : > { %3370 = vmatprep.subr.bf16.mxu1 %v2915_v39  ;;  %v5384_v47 = vld [vmem:[#allocation35_spill] sm:$0xff]  ;;  %v5389_v38 = vld [vmem:[#allocation42_spill] sm:$0xff]  ;;  %v5400_v48 = vld [vmem:[#allocation45_spill] sm:$0xff] }
 0x356   : > { %v5388_v15 = vld [vmem:[#allocation39_spill] sm:$0xff]  ;;  %v5395_v42 = vld [vmem:[#allocation62_spill] sm:$0xff]  ;;  %v5402_v1 = vld [vmem:[#allocation65_spill] sm:$0xff] }
 0x357   : > { %3111 = vmatpush3.bf16.msra.mxu0 %v4645_v52  ;;  %v5392_v8 = vld [vmem:[#allocation59_spill] sm:$0xff]  ;;  %v5399_v53 = vld [vmem:[#allocation46_spill] sm:$0xff]  ;;  %v5403_v7 = vld [vmem:[#allocation48_spill] sm:$0xff] }
 0x358   : > { %3112 = vmatprep.subr.bf16.mxu0 %v4648_v55  ;;  %3371 = vmatpush3.bf16.msra.mxu1 %v2915_v39  ;;  %v5390_v39 = vld [vmem:[#allocation41_spill] sm:$0xff]  ;;  %v5398_v3 = vld [vmem:[#allocation63_spill] sm:$0xff]  ;;  %v5401_v0 = vld [vmem:[#allocation66_spill] sm:$0xff] }
 0x359   : > { %3372 = vmatprep.subr.bf16.mxu1 %v2916_v54  ;;  %v5404_v11 = vld [vmem:[#allocation47_spill] sm:$0xff]  ;;  %v5405_v16 = vld [vmem:[#allocation50_spill] sm:$0xff] }
 0x35a   : > { %v2907_v13 = vcombine.low %v5404_v11, %v5403_v7 }
 0x35b   : > { %3113 = vmatpush3.bf16.msra.mxu0 %v4653_v56 }
 0x35c   : > { %3114 = vmatprep.subr.bf16.mxu0 %v4656_v57  ;;  %3373 = vmatpush3.bf16.msra.mxu1 %v2916_v54  ;;  %v5396_v54 = vld [vmem:[#allocation61_spill] sm:$0xff] }
 0x35d   : > { %3374 = vmatprep.subr.bf16.mxu1 %v2917_v50 }
 0x35f   : > { %3115 = vmatpush3.bf16.msra.mxu0 %v4661_v58 }
 0x360   : > { %3116 = vmatprep.subr.bf16.mxu0 %v4664_v59  ;;  %3375 = vmatpush3.bf16.msra.mxu1 %v2917_v50  ;;  %v2925_v50 = vcombine.low %v5398_v3, %v5397_v2 }
 0x361   : > { %3376 = vmatprep.subr.bf16.mxu1 %v2918_v4 }
 0x363   : > { %3117 = vmatpush3.bf16.msra.mxu0 %v4669_v62 }
 0x364   : > { %3118 = vmatprep.subr.bf16.mxu0 %v4672_v63  ;;  %3377 = vmatpush3.bf16.msra.mxu1 %v2918_v4  ;;  %v2926_v4 = vcombine.low %v5402_v1, %v5401_v0 }
 0x365   : > { %3410 = vmatprep.subr.bf16.mxu1 %v2919_v12 }
 0x367   : > { %3119 = vmatpush3.bf16.msra.mxu0 %v4677_v22  ;;  %3379 = vmatmul.mubr.bf16.vlgmr.msra.gmra.mrb[0].mxu1 %v4637_v49  ;;  %v2889_v49 = vcombine.low %v5376_v28, %v5375_v44 }
 0x368   : > { %3120 = vmatprep.subr.bf16.mxu0 %v4680_v21  ;;  %3382 = vmatprep.mubr.bf16.mxu1 %v4645_v52  ;;  %v5379_v52 = vld [vmem:[#allocation32_spill] sm:$0xff] }
 0x369   : > { %3411 = vmatpush3.bf16.msra.mxu1 %v2919_v12  ;;  %v2892_v45 = vcombine.high %v5380_v41, %v5379_v52  ;;  %v2908_v12 = vcombine.high %v5404_v11, %v5403_v7 }
 0x36a   : > { %3412 = vmatprep.subr.bf16.mxu1 %v2920_v6 }
 0x36b   : > { %3121 = vmatpush3.bf16.msra.mxu0 %v4689_v23 }
 0x36d   : > { %3413 = vmatpush3.bf16.msra.mxu1 %v2920_v6 }
 0x36e   : > { %1839 = vmatmul.mubr.bf16.vlgmr.msra.gmra.mrb[0].mxu0 %v2879_v43  ;;  %3414 = vmatprep.subr.bf16.mxu1 %v2921_v31  ;;  %v2922_v43 = vcombine.low %v5378_v29, %v5377_v26 }
 0x36f   : > { %1846 = vmatprep.mubr.bf16.mxu0 %v2882_v40  ;;  %3383 = vmatmul.mubr.bf16.gmra.mrb[4].mxu1 %v4653_v56  ;;  %v2891_v56 = vcombine.low %v5380_v41, %v5379_v52  ;;  %v5383_v40 = vld [vmem:[#allocation36_spill] sm:$0xff] }
 0x370   : > { %3386 = vmatprep.mubr.bf16.mxu1 %v4661_v58  ;;  %v5382_v58 = vld [vmem:[#allocation33_spill] sm:$0xff] }
 0x371   : > { %3415 = vmatpush3.bf16.msra.mxu1 %v2921_v31  ;;  %v2894_v25 = vcombine.high %v5382_v58, %v5381_v27  ;;  %v2893_v46 = vcombine.low %v5382_v58, %v5381_v27 }
 0x372   : > { %3416 = vmatprep.subr.bf16.mxu1 %v2922_v43 }
 0x375   : > { %3417 = vmatpush3.bf16.msra.mxu1 %v2922_v43 }
 0x376   : > { %1847 = vmatmul.mubr.bf16.gmra.mrb[4].mxu0 %v2881_v14  ;;  %v5387_v14 = vld [vmem:[#allocation40_spill] sm:$0xff] }
 0x377   : > { %1854 = vmatprep.mubr.bf16.mxu0 %v2884_v60  ;;  %3387 = vmatmul.mubr.bf16.gmra.mrb[8].mxu1 %v4669_v62  ;;  %v2896_v62 = vcombine.high %v5384_v47, %v5383_v40  ;;  %v2901_v60 = vcombine.low %v5390_v39, %v5389_v38 }
 0x378   : > { %3390 = vmatprep.mubr.bf16.mxu1 %v4677_v22  ;;  %v2895_v22 = vcombine.low %v5384_v47, %v5383_v40 }
 0x37e   : > { %1855 = vmatmul.mubr.bf16.gmra.mrb[8].mxu0 %v2883_v24  ;;  %v2924_v24 = vcombine.low %v5396_v54, %v5395_v42 }
 0x37f   : > { %1862 = vmatprep.mubr.bf16.mxu0 %v2886_v61  ;;  %3391 = vmatmul.mubr.bf16.gmra.mrb[12].mxu1 %v4689_v23  ;;  %v2898_v23 = vcombine.high %v5386_v19, %v5385_v18  ;;  %v2906_v61 = vcombine.high %v5400_v48, %v5399_v53 }
 0x380   : > { %3394 = vmatprep.mubr.bf16.mxu1 %v4628_v35  ;;  %v2897_v35 = vcombine.low %v5386_v19, %v5385_v18 }
 0x386   : > { %1863 = vmatmul.mubr.bf16.gmra.mrb[12].mxu0 %v2885_v5  ;;  %v2905_v5 = vcombine.low %v5400_v48, %v5399_v53 }
 0x387   : > { %1870 = vmatprep.mubr.bf16.mxu0 %v2888_v33  ;;  %3395 = vmatmul.mubr.bf16.gmra.mrb[16].mxu1 %v4632_v37  ;;  %v2900_v37 = vcombine.high %v5388_v15, %v5387_v14  ;;  %v5406_v33 = vld [vmem:[#allocation49_spill] sm:$0xff] }
 0x388   : > { %3398 = vmatprep.mubr.bf16.mxu1 %v4640_v51  ;;  %v2899_v51 = vcombine.low %v5388_v15, %v5387_v14  ;;  %v2910_v17 = vcombine.high %v5406_v33, %v5405_v16  ;;  %v2909_v10 = vcombine.low %v5406_v33, %v5405_v16 }
 0x38e   : > { %1871 = vmatmul.mubr.bf16.gmra.mrb[16].mxu0 %v2887_v32 }
 0x38f   : > { %1878 = vmatprep.mubr.bf16.mxu0 %v2890_v30  ;;  %3399 = vmatmul.mubr.bf16.gmra.mrb[20].mxu1 %v4648_v55  ;;  %v2902_v55 = vcombine.high %v5390_v39, %v5389_v38 }
 0x390   : > { %3402 = vmatprep.mubr.bf16.mxu1 %v4656_v57  ;;  %v5391_v57 = vld [vmem:[#allocation60_spill] sm:$0xff] }
 0x391   : > { %v2923_v9 = vcombine.low %v5392_v8, %v5391_v57 }
 0x393   : > { %3418 = vmatprep.subr.bf16.mxu1 %v2923_v9 }
 0x394   : > { %3419 = vmatpush3.bf16.msra.mxu1 %v2923_v9 }
 0x395   : > { %3420 = vmatprep.subr.bf16.mxu1 %v2924_v24 }
 0x396   : > { %1879 = vmatmul.mubr.bf16.gmra.mrb[20].mxu0 %v2889_v49 }
 0x397   : > { %1886 = vmatprep.mubr.bf16.mxu0 %v2892_v45  ;;  %3403 = vmatmul.mubr.bf16.gmra.mrb[24].mxu1 %v4664_v59  ;;  %v5393_v59 = vld [vmem:[#allocation44_spill] sm:$0xff] }
 0x398   : > { %3406 = vmatprep.mubr.bf16.mxu1 %v4672_v63  ;;  %v5394_v63 = vld [vmem:[#allocation43_spill] sm:$0xff]  ;;  %3421 = vmatpush3.bf16.msra.mxu1 %v2924_v24 }
 0x399   : > { %v2904_v20 = vcombine.high %v5394_v63, %v5393_v59  ;;  %3422 = vmatprep.subr.bf16.mxu1 %v2925_v50 }
 0x39c   : > { %3423 = vmatpush3.bf16.msra.mxu1 %v2925_v50 }
 0x39d   : > { %3424 = vmatprep.subr.bf16.mxu1 %v2926_v4 }
 0x39e   : > { %1887 = vmatmul.mubr.bf16.gmra.mrb[24].mxu0 %v2891_v56 }
 0x39f   : > { %1894 = vmatprep.mubr.bf16.mxu0 %v2894_v25  ;;  %3407 = vmatmul.mubr.bf16.gmra.mrb[28].mxu1 %v4680_v21  ;;  %v2903_v21 = vcombine.low %v5394_v63, %v5393_v59 }
 0x3a0   : > { %3425 = vmatpush3.bf16.msra.mxu1 %v2926_v4 }
 0x3a6   : > { %1895 = vmatmul.mubr.bf16.gmra.mrb[28].mxu0 %v2893_v46 }
 0x3a7   : > { %1902 = vmatprep.mubr.bf16.mxu0 %v2896_v62 }
 0x3ae   : > { %1903 = vmatmul.mubr.bf16.gmra.mrb[32].mxu0 %v2895_v22 }
 0x3af   : > { %1910 = vmatprep.mubr.bf16.mxu0 %v2898_v23 }
 0x3b6   : > { %1911 = vmatmul.mubr.bf16.gmra.mrb[36].mxu0 %v2897_v35 }
 0x3b7   : > { %1918 = vmatprep.mubr.bf16.mxu0 %v2900_v37 }
 0x3be   : > { %1919 = vmatmul.mubr.bf16.gmra.mrb[40].mxu0 %v2899_v51 }
 0x3bf   : > { %1926 = vmatprep.mubr.bf16.mxu0 %v2902_v55 }
 0x3c6   : > { %1927 = vmatmul.mubr.bf16.gmra.mrb[44].mxu0 %v2901_v60 }
 0x3c7   : > { %1934 = vmatprep.mubr.bf16.mxu0 %v2904_v20 }
 0x3ce   : > { %1935 = vmatmul.mubr.bf16.gmra.mrb[48].mxu0 %v2903_v21 }
 0x3cf   : > { %1942 = vmatprep.mubr.bf16.mxu0 %v2906_v61 }
 0x3d6   : > { %1943 = vmatmul.mubr.bf16.gmra.mrb[52].mxu0 %v2905_v5 }
 0x3d7   : > { %1950 = vmatprep.mubr.bf16.mxu0 %v2908_v12 }
 0x3de   : > { %1951 = vmatmul.mubr.bf16.gmra.mrb[56].mxu0 %v2907_v13 }
 0x3df   : > { %1958 = vmatprep.mubr.bf16.mxu0 %v2910_v17 }
 0x3e6   : > { %1959 = vmatmul.mubr.bf16.gmra.mrb[60].mxu0 %v2909_v10 }
 0x441   : > { %v3122_v6 = vpop.f32.mrb[0].mxu0 }
 0x442   : > { %v3123_v32 = vpop.f32.mrb[1].mxu0 }
 0x443   : > { %v3124_v34 = vadd.f32 %v3123_v32, %v3122_v6  ;;  %v3125_v36 = vpop.f32.mrb[2].mxu0 }
 0x444   : > { %v3126_v31 = vpop.f32.mrb[3].mxu0 }
 0x445   : > { %v3127_v44 = vadd.f32 %v3126_v31, %v3125_v36 }
 0x447   : > { %v1967_v28 = vpack.c.bf16 %v3127_v44, %v3124_v34 }
 0x449   : > { %v3128_v30 = vpop.f32.mrb[4].mxu0  ;;  %3426 = vmatprep.mubr.bf16.mxu1 %v1967_v28 }
 0x44a   : > { %v3129_v26 = vpop.f32.mrb[5].mxu0 }
 0x44b   : > { %v3130_v29 = vadd.f32 %v3129_v26, %v3128_v30  ;;  %v3131_v43 = vpop.f32.mrb[6].mxu0 }
 0x44c   : > { %v3132_v49 = vpop.f32.mrb[7].mxu0 }
 0x44d   : > { %v3133_v52 = vadd.f32 %v3132_v49, %v3131_v43 }
 0x44f   : > { %v1968_v41 = vpack.c.bf16 %v3133_v52, %v3130_v29 }
 0x451   : > { %v3134_v45 = vpop.f32.mrb[8].mxu0  ;;  %3427 = vmatmul.mubr.bf16.vlgmr.msra.gmra.mrb[0].mxu1 %v1968_v41 }
 0x452   : > { %v3135_v56 = vpop.f32.mrb[9].mxu0 }
 0x453   : > { %v3136_v27 = vadd.f32 %v3135_v56, %v3134_v45  ;;  %v3137_v58 = vpop.f32.mrb[10].mxu0 }
 0x454   : > { %v3138_v25 = vpop.f32.mrb[11].mxu0 }
 0x455   : > { %v3139_v46 = vadd.f32 %v3138_v25, %v3137_v58 }
 0x457   : > { %v1969_v40 = vpack.c.bf16 %v3139_v46, %v3136_v27 }
 0x459   : > { %v3140_v47 = vpop.f32.mrb[12].mxu0  ;;  %3430 = vmatprep.mubr.bf16.mxu1 %v1969_v40 }
 0x45a   : > { %v3141_v62 = vpop.f32.mrb[13].mxu0 }
 0x45b   : > { %v3142_v22 = vadd.f32 %v3141_v62, %v3140_v47  ;;  %v3143_v18 = vpop.f32.mrb[14].mxu0 }
 0x45c   : > { %v3144_v19 = vpop.f32.mrb[15].mxu0 }
 0x45d   : > { %v3145_v23 = vadd.f32 %v3144_v19, %v3143_v18 }
 0x45f   : > { %v1970_v35 = vpack.c.bf16 %v3145_v23, %v3142_v22 }
 0x461   : > { %v3146_v14 = vpop.f32.mrb[16].mxu0  ;;  %3431 = vmatmul.mubr.bf16.gmra.mrb[4].mxu1 %v1970_v35 }
 0x462   : > { %v3147_v15 = vpop.f32.mrb[17].mxu0 }
 0x463   : > { %v3148_v37 = vadd.f32 %v3147_v15, %v3146_v14  ;;  %v3149_v51 = vpop.f32.mrb[18].mxu0 }
 0x464   : > { %v3150_v38 = vpop.f32.mrb[19].mxu0 }
 0x465   : > { %v3151_v39 = vadd.f32 %v3150_v38, %v3149_v51 }
 0x467   : > { %v1971_v55 = vpack.c.bf16 %v3151_v39, %v3148_v37 }
 0x469   : > { %v3152_v57 = vpop.f32.mrb[20].mxu0  ;;  %3434 = vmatprep.mubr.bf16.mxu1 %v1971_v55 }
 0x46a   : > { %v3153_v8 = vpop.f32.mrb[21].mxu0 }
 0x46b   : > { %v3154_v9 = vadd.f32 %v3153_v8, %v3152_v57  ;;  %v3155_v60 = vpop.f32.mrb[22].mxu0 }
 0x46c   : > { %v3156_v59 = vpop.f32.mrb[23].mxu0 }
 0x46d   : > { %v3157_v63 = vadd.f32 %v3156_v59, %v3155_v60 }
 0x46f   : > { %v1972_v20 = vpack.c.bf16 %v3157_v63, %v3154_v9 }
 0x471   : > { %v3158_v42 = vpop.f32.mrb[24].mxu0  ;;  %3435 = vmatmul.mubr.bf16.gmra.mrb[8].mxu1 %v1972_v20 }
 0x472   : > { %v3159_v54 = vpop.f32.mrb[25].mxu0 }
 0x473   : > { %v3160_v24 = vadd.f32 %v3159_v54, %v3158_v42  ;;  %v3161_v2 = vpop.f32.mrb[26].mxu0 }
 0x474   : > { %v3162_v3 = vpop.f32.mrb[27].mxu0 }
 0x475   : > { %v3163_v50 = vadd.f32 %v3162_v3, %v3161_v2 }
 0x477   : > { %v1973_v21 = vpack.c.bf16 %v3163_v50, %v3160_v24 }
 0x479   : > { %v3164_v53 = vpop.f32.mrb[28].mxu0  ;;  %3438 = vmatprep.mubr.bf16.mxu1 %v1973_v21  ;;  %v2401_v21 = vlaneseq }
 0x47a   : > { %v3165_v48 = vpop.f32.mrb[29].mxu0 }
 0x47b   : > { %v3166_v61 = vadd.f32 %v3165_v48, %v3164_v53  ;;  %v3167_v0 = vpop.f32.mrb[30].mxu0  ;;  %v2402_v53 = vshrl.u32 %v2401_v21, 7 }
 0x47c   : > { %v3168_v1 = vpop.f32.mrb[31].mxu0 }
 0x47d   : > { %v3169_v4 = vadd.f32 %v3168_v1, %v3167_v0  ;;  %v2403_v48 = vsub.s32 0, %v2402_v53 }
 0x47f   : > { %v1974_v5 = vpack.c.bf16 %v3169_v4, %v3166_v61  ;;  %v5407_v61 = vld [vmem:[#allocation83_spill] sm:$0xff] }
 0x480   : > { %v4798_v0 = vrot.slane %v5407_v61, %v2403_v48 }
 0x481   : > { %v3170_v7 = vpop.f32.mrb[32].mxu0  ;;  %3439 = vmatmul.mubr.bf16.gmra.mrb[12].mxu1 %v1974_v5 }
 0x482   : > { %v3171_v11 = vpop.f32.mrb[33].mxu0 }
 0x483   : > { %v3172_v12 = vadd.f32 %v3171_v11, %v3170_v7  ;;  %v3173_v13 = vpop.f32.mrb[34].mxu0 }
 0x484   : > { %v3174_v16 = vpop.f32.mrb[35].mxu0 }
 0x485   : > { %v3175_v33 = vadd.f32 %v3174_v16, %v3173_v13 }
 0x487   : > { %v1975_v17 = vpack.c.bf16 %v3175_v33, %v3172_v12 }
 0x489   : > { %v3176_v10 = vpop.f32.mrb[36].mxu0  ;;  %3442 = vmatprep.mubr.bf16.mxu1 %v1975_v17 }
 0x48a   : > { %v3177_v6 = vpop.f32.mrb[37].mxu0 }
 0x48b   : > { %v3178_v32 = vadd.f32 %v3177_v6, %v3176_v10  ;;  %v3179_v34 = vpop.f32.mrb[38].mxu0 }
 0x48c   : > { %v3180_v36 = vpop.f32.mrb[39].mxu0 }
 0x48d   : > { %v3181_v31 = vadd.f32 %v3180_v36, %v3179_v34 }
 0x48f   : > { %v1976_v44 = vpack.c.bf16 %v3181_v31, %v3178_v32 }
 0x491   : > { %v3182_v28 = vpop.f32.mrb[40].mxu0  ;;  %3443 = vmatmul.mubr.bf16.gmra.mrb[16].mxu1 %v1976_v44 }
 0x492   : > { %v3183_v30 = vpop.f32.mrb[41].mxu0 }
 0x493   : > { %v3184_v26 = vadd.f32 %v3183_v30, %v3182_v28  ;;  %v3185_v29 = vpop.f32.mrb[42].mxu0 }
 0x494   : > { %v3186_v43 = vpop.f32.mrb[43].mxu0 }
 0x495   : > { %v3187_v49 = vadd.f32 %v3186_v43, %v3185_v29 }
 0x497   : > { %v1977_v52 = vpack.c.bf16 %v3187_v49, %v3184_v26 }
 0x499   : > { %v3188_v41 = vpop.f32.mrb[44].mxu0  ;;  %3446 = vmatprep.mubr.bf16.mxu1 %v1977_v52 }
 0x49a   : > { %v3189_v45 = vpop.f32.mrb[45].mxu0 }
 0x49b   : > { %v3190_v56 = vadd.f32 %v3189_v45, %v3188_v41  ;;  %v3191_v27 = vpop.f32.mrb[46].mxu0 }
 0x49c   : > { %v3192_v58 = vpop.f32.mrb[47].mxu0 }
 0x49d   : > { %v3193_v25 = vadd.f32 %v3192_v58, %v3191_v27 }
 0x49f   : > { %v1978_v46 = vpack.c.bf16 %v3193_v25, %v3190_v56 }
 0x4a1   : > { %v3194_v40 = vpop.f32.mrb[48].mxu0  ;;  %3447 = vmatmul.mubr.bf16.gmra.mrb[20].mxu1 %v1978_v46 }
 0x4a2   : > { %v3195_v47 = vpop.f32.mrb[49].mxu0 }
 0x4a3   : > { %v3196_v62 = vadd.f32 %v3195_v47, %v3194_v40  ;;  %v3197_v22 = vpop.f32.mrb[50].mxu0 }
 0x4a4   : > { %v3198_v18 = vpop.f32.mrb[51].mxu0 }
 0x4a5   : > { %v3199_v19 = vadd.f32 %v3198_v18, %v3197_v22 }
 0x4a7   : > { %v1979_v23 = vpack.c.bf16 %v3199_v19, %v3196_v62 }
 0x4a9   : > { %v3200_v35 = vpop.f32.mrb[52].mxu0  ;;  %3450 = vmatprep.mubr.bf16.mxu1 %v1979_v23 }
 0x4aa   : > { %v3201_v14 = vpop.f32.mrb[53].mxu0 }
 0x4ab   : > { %v3202_v15 = vadd.f32 %v3201_v14, %v3200_v35  ;;  %v3203_v37 = vpop.f32.mrb[54].mxu0 }
 0x4ac   : > { %v3204_v51 = vpop.f32.mrb[55].mxu0 }
 0x4ad   : > { %v3205_v38 = vadd.f32 %v3204_v51, %v3203_v37 }
 0x4af   : > { %v1980_v39 = vpack.c.bf16 %v3205_v38, %v3202_v15 }
 0x4b1   : > { %v3206_v55 = vpop.f32.mrb[56].mxu0  ;;  %3451 = vmatmul.mubr.bf16.gmra.mrb[24].mxu1 %v1980_v39 }
 0x4b2   : > { %v3207_v57 = vpop.f32.mrb[57].mxu0 }
 0x4b3   : > { %v3208_v8 = vadd.f32 %v3207_v57, %v3206_v55  ;;  %v3209_v9 = vpop.f32.mrb[58].mxu0 }
 0x4b4   : > { %v3210_v60 = vpop.f32.mrb[59].mxu0 }
 0x4b5   : > { %v3211_v59 = vadd.f32 %v3210_v60, %v3209_v9 }
 0x4b7   : > { %v1981_v63 = vpack.c.bf16 %v3211_v59, %v3208_v8 }
 0x4b9   : > { %v3212_v20 = vpop.f32.mrb[60].mxu0  ;;  %3454 = vmatprep.mubr.bf16.mxu1 %v1981_v63 }
 0x4ba   : > { %v3213_v42 = vpop.f32.mrb[61].mxu0 }
 0x4bb   : > { %v3214_v54 = vadd.f32 %v3213_v42, %v3212_v20  ;;  %v3215_v24 = vpop.f32.mrb[62].mxu0 }
 0x4bc   : > { %v3216_v2 = vpop.f32.mrb[63].mxu0 }
 0x4bd   : > { %v3217_v3 = vadd.f32 %v3216_v2, %v3215_v24 }
 0x4bf   : > { %v1982_v50 = vpack.c.bf16 %v3217_v3, %v3214_v54 }
 0x4c1   : > { %3455 = vmatmul.mubr.bf16.gmra.mrb[28].mxu1 %v1982_v50 }
 0x524   : > { %v3428_v1 = vpop.f32.mrb[0].mxu1 }
 0x525   : > { %v4801_v4 = vadd.f32 %v3428_v1, %v4798_v0  ;;  %v2274_v5 = vpop.f32.mrb[1].mxu1 }
 0x526   : > { %v4804_v7 = vadd.f32 %v4798_v0, %v2274_v5  ;;  %v3429_v11 = vpop.f32.mrb[2].mxu1 }
 0x527   : > { %v2439_v12 = vmax.f32 %v4801_v4, 0.0  ;;  %v4808_v13 = vadd.f32 %v3429_v11, %v4798_v0  ;;  %v2277_v16 = vpop.f32.mrb[3].mxu1 }
 0x528   : > { %v2437_v33 = vmax.f32 %v4804_v7, 0.0  ;;  %v4812_v17 = vadd.f32 %v4798_v0, %v2277_v16 }
 0x529   : > { %v2440_v10 = vmax.f32 %v4808_v13, 0.0 }
 0x52a   : > { %v2438_v6 = vmax.f32 %v4812_v17, 0.0 }
 0x534   : > { %v3432_v32 = vpop.f32.mrb[4].mxu1 }
 0x535   : > { %v4817_v34 = vadd.f32 %v3432_v32, %v4798_v0  ;;  %v2290_v36 = vpop.f32.mrb[5].mxu1 }
 0x536   : > { %v4820_v31 = vadd.f32 %v4798_v0, %v2290_v36  ;;  %v3433_v44 = vpop.f32.mrb[6].mxu1 }
 0x537   : > { %v2443_v28 = vmax.f32 %v4817_v34, 0.0  ;;  %v4824_v30 = vadd.f32 %v3433_v44, %v4798_v0  ;;  %v2293_v26 = vpop.f32.mrb[7].mxu1 }
 0x538   : > { %v2441_v29 = vmax.f32 %v4820_v31, 0.0  ;;  %v4828_v43 = vadd.f32 %v4798_v0, %v2293_v26 }
 0x539   : > { %v2444_v49 = vmax.f32 %v4824_v30, 0.0 }
 0x53a   : > { %v2442_v52 = vmax.f32 %v4828_v43, 0.0 }
 0x544   : > { %v3436_v41 = vpop.f32.mrb[8].mxu1 }
 0x545   : > { %v4833_v45 = vadd.f32 %v3436_v41, %v4798_v0  ;;  %v2306_v56 = vpop.f32.mrb[9].mxu1 }
 0x546   : > { %v4836_v27 = vadd.f32 %v4798_v0, %v2306_v56  ;;  %v3437_v58 = vpop.f32.mrb[10].mxu1 }
 0x547   : > { %v2447_v25 = vmax.f32 %v4833_v45, 0.0  ;;  %v4840_v46 = vadd.f32 %v3437_v58, %v4798_v0  ;;  %v2309_v40 = vpop.f32.mrb[11].mxu1 }
 0x548   : > { %v2445_v47 = vmax.f32 %v4836_v27, 0.0  ;;  %v4844_v62 = vadd.f32 %v4798_v0, %v2309_v40 }
 0x549   : > { %v2448_v22 = vmax.f32 %v4840_v46, 0.0 }
 0x54a   : > { %v2446_v18 = vmax.f32 %v4844_v62, 0.0 }
 0x554   : > { %v3440_v19 = vpop.f32.mrb[12].mxu1 }
 0x555   : > { %v4849_v23 = vadd.f32 %v3440_v19, %v4798_v0  ;;  %v2322_v35 = vpop.f32.mrb[13].mxu1 }
 0x556   : > { %v4852_v14 = vadd.f32 %v4798_v0, %v2322_v35  ;;  %v3441_v15 = vpop.f32.mrb[14].mxu1 }
 0x557   : > { %v4856_v51 = vadd.f32 %v3441_v15, %v4798_v0  ;;  %v2325_v38 = vpop.f32.mrb[15].mxu1 }
 0x558   : > { %v4860_v55 = vadd.f32 %v4798_v0, %v2325_v38 }
 0x564   : > { %v3444_v9 = vpop.f32.mrb[16].mxu1 }
 0x565   : > { %v4865_v60 = vadd.f32 %v3444_v9, %v4798_v0  ;;  %v2338_v59 = vpop.f32.mrb[17].mxu1 }
 0x566   : > { %v4868_v63 = vadd.f32 %v4798_v0, %v2338_v59  ;;  %v3445_v20 = vpop.f32.mrb[18].mxu1 }
 0x567   : > { %v2455_v42 = vmax.f32 %v4865_v60, 0.0  ;;  %v4872_v54 = vadd.f32 %v3445_v20, %v4798_v0  ;;  %v2341_v24 = vpop.f32.mrb[19].mxu1 }
 0x568   : > { %v2453_v2 = vmax.f32 %v4868_v63, 0.0  ;;  %v4876_v3 = vadd.f32 %v4798_v0, %v2341_v24 }
 0x569   : > { %v2456_v50 = vmax.f32 %v4872_v54, 0.0 }
 0x56a   : > { %v2454_v21 = vmax.f32 %v4876_v3, 0.0 }
 0x574   : > { %v3448_v53 = vpop.f32.mrb[20].mxu1 }
 0x575   : > { %v4881_v48 = vadd.f32 %v3448_v53, %v4798_v0  ;;  %v2354_v61 = vpop.f32.mrb[21].mxu1 }
 0x576   : > { %v4884_v1 = vadd.f32 %v4798_v0, %v2354_v61  ;;  %v3449_v5 = vpop.f32.mrb[22].mxu1 }
 0x577   : > { %v2459_v11 = vmax.f32 %v4881_v48, 0.0  ;;  %v4888_v16 = vadd.f32 %v3449_v5, %v4798_v0  ;;  %v2357_v32 = vpop.f32.mrb[23].mxu1 }
 0x578   : > { %v2457_v36 = vmax.f32 %v4884_v1, 0.0  ;;  %v4892_v44 = vadd.f32 %v4798_v0, %v2357_v32 }
 0x579   : > { %v2460_v26 = vmax.f32 %v4888_v16, 0.0 }
 0x57a   : > { %v2458_v41 = vmax.f32 %v4892_v44, 0.0 }
 0x584   : > { %v3452_v56 = vpop.f32.mrb[24].mxu1 }
 0x585   : > { %v4897_v58 = vadd.f32 %v3452_v56, %v4798_v0  ;;  %v2370_v40 = vpop.f32.mrb[25].mxu1 }
 0x586   : > { %v4900_v19 = vadd.f32 %v4798_v0, %v2370_v40  ;;  %v3453_v35 = vpop.f32.mrb[26].mxu1 }
 0x587   : > { %5408 = vst [vmem:[#allocation90_spill] sm:$0xff] %v4897_v58  ;;  %v2463_v15 = vmax.f32 %v4897_v58, 0.0  ;;  %v4904_v38 = vadd.f32 %v3453_v35, %v4798_v0  ;;  %v2373_v9 = vpop.f32.mrb[27].mxu1 }
 0x588   : > { %v2461_v59 = vmax.f32 %v4900_v19, 0.0  ;;  %v4908_v20 = vadd.f32 %v4798_v0, %v2373_v9 }
 0x589   : > { %5409 = vst [vmem:[#allocation91_spill] sm:$0xff] %v4904_v38  ;;  %v2464_v24 = vmax.f32 %v4904_v38, 0.0 }
 0x58a   : > { %v2462_v53 = vmax.f32 %v4908_v20, 0.0 }
 0x594   : > { %v3456_v61 = vpop.f32.mrb[28].mxu1  ;;  %2472 = sbr.rel (%p2927_p3) target bundleno = 1449 (0x5a9), region = 76 }
 0x595   : > { %v4913_v5 = vadd.f32 %v3456_v61, %v4798_v0  ;;  %v2386_v32 = vpop.f32.mrb[29].mxu1 }
 0x596   : > { %v4916_v56 = vadd.f32 %v4798_v0, %v2386_v32  ;;  %v3457_v40 = vpop.f32.mrb[30].mxu1  ;;  %v2474_v32 = vpack.c.bf16 (!%p2927_p3), %v2440_v10, %v2439_v12  ;;  %v2478_v12 = vpack.c.bf16 (!%p2927_p3), %v2448_v22, %v2447_v25  ;;  %v5414_v10 = vmax.f32 (!%p2927_p3), %v4852_v14, 0.0 }
 0x597   : > { %5410 = vst [vmem:[#allocation92_spill] sm:$0xff] %v4913_v5  ;;  %v2467_v35 = vmax.f32 %v4913_v5, 0.0  ;;  %v4920_v57 = vadd.f32 %v3457_v40, %v4798_v0  ;;  %v2389_v9 = vpop.f32.mrb[31].mxu1  ;;  %v2475_v40 = vpack.c.bf16 (!%p2927_p3), %v2442_v52, %v2441_v29  ;;  %v5416_v52 = vmax.f32 (!%p2927_p3), %v4849_v23, 0.0 }
 0x598   : > { %5411 = vst [vmem:[#allocation93_spill] sm:$0xff] %v4916_v56  ;;  %v2465_v37 = vmax.f32 %v4916_v56, 0.0  ;;  %v4924_v8 = vadd.f32 %v4798_v0, %v2389_v9  ;;  %v2473_v0 = vpack.c.bf16 (!%p2927_p3), %v2438_v6, %v2437_v33  ;;  %v2476_v9 = vpack.c.bf16 (!%p2927_p3), %v2444_v49, %v2443_v28 }
 0x599   : > { %5412 = vst [vmem:[#allocation94_spill] sm:$0xff] %v4920_v57  ;;  %v2468_v39 = vmax.f32 %v4920_v57, 0.0  ;;  %v2477_v33 = vpack.c.bf16 (!%p2927_p3), %v2446_v18, %v2445_v47  ;;  %v5415_v6 = vmax.f32 (!%p2927_p3), %v4860_v55, 0.0  ;;  %v5417_v28 = vmax.f32 (!%p2927_p3), %v4856_v51, 0.0 }
 0x59a   : > { %5413 = vst [vmem:[#allocation95_spill] sm:$0xff] %v4924_v8  ;;  %v2466_v61 = vmax.f32 %v4924_v8, 0.0  ;;  %v2481_v57 = vpack.c.bf16 (!%p2927_p3), %v2454_v21, %v2453_v2  ;;  %v2482_v5 = vpack.c.bf16 (!%p2927_p3), %v2456_v50, %v2455_v42  ;;  %v2483_v8 = vpack.c.bf16 (!%p2927_p3), %v2458_v41, %v2457_v36 }
 0x59b   : > { %s5447_s26 = smov (!%p2489_p6, %s2493_s26), %s2492_s7  ;;  %v2479_v29 = vpack.c.bf16 %v5415_v6, %v5414_v10  ;;  %v2480_v49 = vpack.c.bf16 %v5417_v28, %v5416_v52  ;;  %v2484_v56 = vpack.c.bf16 %v2460_v26, %v2459_v11  ;;  %v2485_v47 = vpack.c.bf16 %v2462_v53, %v2461_v59 }
 0x59c   : > { %p2930_p1 = scmp.lt.s32.totalorder %s5447_s26, 0  ;;  %s2499_s17 = sadd.s32 2, %s5447_s26  ;;  %v2486_v18 = vpack.c.bf16 %v2464_v24, %v2463_v15  ;;  %v2487_v38 = vpack.c.bf16 %v2466_v61, %v2465_v37  ;;  %v2488_v58 = vpack.c.bf16 %v2468_v39, %v2467_v35 }
 0x59e   : > { %s5449_s17 = smov (!%p2930_p1, %s2499_s17), %s5447_s26 }
 0x59f   : > { %s2945_s12 = sshll.u32 %s5449_s17, 7 }
 0x5a0   : > { %s2504_s11 = scalar_lea.vmem [#allocation2], %s2945_s12 }
 0x5a1   : > { %2505 = vst [vmem:[%s2504_s11] sm:$0xff] %v2473_v0  ;;  %2506 = vst [vmem:[%s2504_s11 + $0x8] sm:$0xff] %v2474_v32 }
 0x5a2   : > { %2507 = vst [vmem:[%s2504_s11 + $0x10] sm:$0xff] %v2475_v40  ;;  %2508 = vst [vmem:[%s2504_s11 + $0x18] sm:$0xff] %v2476_v9 }
 0x5a3   : > { %2509 = vst [vmem:[%s2504_s11 + $0x20] sm:$0xff] %v2477_v33  ;;  %2510 = vst [vmem:[%s2504_s11 + $0x28] sm:$0xff] %v2478_v12 }
 0x5a4   : > { %2511 = vst [vmem:[%s2504_s11 + $0x30] sm:$0xff] %v2479_v29  ;;  %2512 = vst [vmem:[%s2504_s11 + $0x38] sm:$0xff] %v2480_v49 }
 0x5a5   : > { %2513 = vst [vmem:[%s2504_s11 + $0x40] sm:$0xff] %v2481_v57  ;;  %2514 = vst [vmem:[%s2504_s11 + $0x48] sm:$0xff] %v2482_v5 }
 0x5a6   : > { %2515 = vst [vmem:[%s2504_s11 + $0x50] sm:$0xff] %v2483_v8  ;;  %2516 = vst [vmem:[%s2504_s11 + $0x58] sm:$0xff] %v2484_v56 }
 0x5a7   : > { %2517 = vst [vmem:[%s2504_s11 + $0x60] sm:$0xff] %v2485_v47  ;;  %2518 = vst [vmem:[%s2504_s11 + $0x68] sm:$0xff] %v2486_v18 }
 0x5a8   : > { %2519 = vst [vmem:[%s2504_s11 + $0x70] sm:$0xff] %v2487_v38  ;;  %2520 = vst [vmem:[%s2504_s11 + $0x78] sm:$0xff] %v2488_v58 }
 0x5a9 PF: > { %p2933_p4 = scmp.ne.s32.totalorder %s3881_s21, 1 }
 0x5aa   : > { %2526 = vst [vmem:[#allocation11] sm:$0xff] (!%p2933_p4), %v4804_v7  ;;  %2527 = vst [vmem:[#allocation11 + $0x8] sm:$0xff] (!%p2933_p4), %v4812_v17  ;;  %v5418_v25 = vld [vmem:[#allocation90_spill] sm:$0xff] (!%p2933_p4)  ;;  %v5419_v22 = vld [vmem:[#allocation91_spill] sm:$0xff] (!%p2933_p4) }
 0x5ab   : > { %2524 = sbr.rel (%p2933_p4) target bundleno = 1466 (0x5ba), region = 80  ;;  %2528 = vst [vmem:[#allocation11 + $0x10] sm:$0xff] (!%p2933_p4), %v4801_v4  ;;  %2529 = vst [vmem:[#allocation11 + $0x18] sm:$0xff] (!%p2933_p4), %v4808_v13 }
 0x5ac   : > { %2530 = vst [vmem:[#allocation11 + $0x20] sm:$0xff] (!%p2933_p4), %v4820_v31  ;;  %2531 = vst [vmem:[#allocation11 + $0x28] sm:$0xff] (!%p2933_p4), %v4828_v43  ;;  %v5422_v57 = vld [vmem:[#allocation92_spill] sm:$0xff] (!%p2933_p4) }
 0x5ad   : > { %2532 = vst [vmem:[#allocation11 + $0x30] sm:$0xff] (!%p2933_p4), %v4817_v34  ;;  %2533 = vst [vmem:[#allocation11 + $0x38] sm:$0xff] (!%p2933_p4), %v4824_v30  ;;  %v5420_v37 = vld [vmem:[#allocation93_spill] sm:$0xff] (!%p2933_p4) }
 0x5ae   : > { %2534 = vst [vmem:[#allocation11 + $0x40] sm:$0xff] (!%p2933_p4), %v4836_v27  ;;  %2535 = vst [vmem:[#allocation11 + $0x48] sm:$0xff] (!%p2933_p4), %v4844_v62  ;;  %v5423_v8 = vld [vmem:[#allocation94_spill] sm:$0xff] (!%p2933_p4) }
 0x5af   : > { %2536 = vst [vmem:[#allocation11 + $0x50] sm:$0xff] (!%p2933_p4), %v4833_v45  ;;  %2537 = vst [vmem:[#allocation11 + $0x58] sm:$0xff] (!%p2933_p4), %v4840_v46  ;;  %v5421_v39 = vld [vmem:[#allocation95_spill] sm:$0xff] (!%p2933_p4) }
 0x5b0   : > { %2538 = vst [vmem:[#allocation11 + $0x60] sm:$0xff] (!%p2933_p4), %v4852_v14  ;;  %2539 = vst [vmem:[#allocation11 + $0x68] sm:$0xff] (!%p2933_p4), %v4860_v55 }
 0x5b1   : > { %2540 = vst [vmem:[#allocation11 + $0x70] sm:$0xff] (!%p2933_p4), %v4849_v23  ;;  %2541 = vst [vmem:[#allocation11 + $0x78] sm:$0xff] (!%p2933_p4), %v4856_v51 }
 0x5b2   : > { %2542 = vst [vmem:[#allocation11 + $0x80] sm:$0xff] %v4868_v63  ;;  %2543 = vst [vmem:[#allocation11 + $0x88] sm:$0xff] %v4876_v3 }
 0x5b3   : > { %2544 = vst [vmem:[#allocation11 + $0x90] sm:$0xff] %v4865_v60  ;;  %2545 = vst [vmem:[#allocation11 + $0x98] sm:$0xff] %v4872_v54 }
 0x5b4   : > { %2546 = vst [vmem:[#allocation11 + $0xa0] sm:$0xff] %v4884_v1  ;;  %2547 = vst [vmem:[#allocation11 + $0xa8] sm:$0xff] %v4892_v44 }
 0x5b5   : > { %2548 = vst [vmem:[#allocation11 + $0xb0] sm:$0xff] %v4881_v48  ;;  %2549 = vst [vmem:[#allocation11 + $0xb8] sm:$0xff] %v4888_v16 }
 0x5b6   : > { %2550 = vst [vmem:[#allocation11 + $0xc0] sm:$0xff] %v4900_v19  ;;  %2551 = vst [vmem:[#allocation11 + $0xc8] sm:$0xff] %v4908_v20 }
 0x5b7   : > { %2552 = vst [vmem:[#allocation11 + $0xd0] sm:$0xff] %v5418_v25  ;;  %2553 = vst [vmem:[#allocation11 + $0xd8] sm:$0xff] %v5419_v22 }
 0x5b8   : > { %2554 = vst [vmem:[#allocation11 + $0xe0] sm:$0xff] %v5420_v37  ;;  %2555 = vst [vmem:[#allocation11 + $0xe8] sm:$0xff] %v5421_v39 }
 0x5b9   : > { %2556 = vst [vmem:[#allocation11 + $0xf0] sm:$0xff] %v5422_v57  ;;  %2557 = vst [vmem:[#allocation11 + $0xf8] sm:$0xff] %v5423_v8 }
 0x5ba PF: > { %p2934_p8 = scmp.ne.s32.totalorder %s3881_s21, 2 }
 0x5bb   : > { %2563 = vst [vmem:[#allocation10] sm:$0xff] (!%p2934_p8), %v4804_v7  ;;  %2564 = vst [vmem:[#allocation10 + $0x8] sm:$0xff] (!%p2934_p8), %v4812_v17  ;;  %v5425_v7 = vld [vmem:[#allocation91_spill] sm:$0xff] (!%p2934_p8) }
 0x5bc   : > { %2561 = sbr.rel (%p2934_p8) target bundleno = 1483 (0x5cb), region = 84  ;;  %2565 = vst [vmem:[#allocation10 + $0x10] sm:$0xff] (!%p2934_p8), %v4801_v4  ;;  %2566 = vst [vmem:[#allocation10 + $0x18] sm:$0xff] (!%p2934_p8), %v4808_v13  ;;  %v5424_v4 = vld [vmem:[#allocation90_spill] sm:$0xff] (!%p2934_p8)  ;;  %v5426_v13 = vld [vmem:[#allocation93_spill] sm:$0xff] (!%p2934_p8) }
 0x5bd   : > { %2567 = vst [vmem:[#allocation10 + $0x20] sm:$0xff] (!%p2934_p8), %v4820_v31  ;;  %2568 = vst [vmem:[#allocation10 + $0x28] sm:$0xff] (!%p2934_p8), %v4828_v43  ;;  %v5427_v17 = vld [vmem:[#allocation95_spill] sm:$0xff] (!%p2934_p8)  ;;  %v5429_v31 = vld [vmem:[#allocation94_spill] sm:$0xff] (!%p2934_p8) }
 0x5be   : > { %2569 = vst [vmem:[#allocation10 + $0x30] sm:$0xff] (!%p2934_p8), %v4817_v34  ;;  %2570 = vst [vmem:[#allocation10 + $0x38] sm:$0xff] (!%p2934_p8), %v4824_v30  ;;  %v5428_v34 = vld [vmem:[#allocation92_spill] sm:$0xff] (!%p2934_p8) }
 0x5bf   : > { %2571 = vst [vmem:[#allocation10 + $0x40] sm:$0xff] (!%p2934_p8), %v4836_v27  ;;  %2572 = vst [vmem:[#allocation10 + $0x48] sm:$0xff] (!%p2934_p8), %v4844_v62 }
 0x5c0   : > { %2573 = vst [vmem:[#allocation10 + $0x50] sm:$0xff] (!%p2934_p8), %v4833_v45  ;;  %2574 = vst [vmem:[#allocation10 + $0x58] sm:$0xff] (!%p2934_p8), %v4840_v46 }
 0x5c1   : > { %2575 = vst [vmem:[#allocation10 + $0x60] sm:$0xff] (!%p2934_p8), %v4852_v14  ;;  %2576 = vst [vmem:[#allocation10 + $0x68] sm:$0xff] (!%p2934_p8), %v4860_v55 }
 0x5c2   : > { %2577 = vst [vmem:[#allocation10 + $0x70] sm:$0xff] (!%p2934_p8), %v4849_v23  ;;  %2578 = vst [vmem:[#allocation10 + $0x78] sm:$0xff] (!%p2934_p8), %v4856_v51 }
 0x5c3   : > { %2579 = vst [vmem:[#allocation10 + $0x80] sm:$0xff] %v4868_v63  ;;  %2580 = vst [vmem:[#allocation10 + $0x88] sm:$0xff] %v4876_v3 }
 0x5c4   : > { %2581 = vst [vmem:[#allocation10 + $0x90] sm:$0xff] %v4865_v60  ;;  %2582 = vst [vmem:[#allocation10 + $0x98] sm:$0xff] %v4872_v54 }
 0x5c5   : > { %2583 = vst [vmem:[#allocation10 + $0xa0] sm:$0xff] %v4884_v1  ;;  %2584 = vst [vmem:[#allocation10 + $0xa8] sm:$0xff] %v4892_v44 }
 0x5c6   : > { %2585 = vst [vmem:[#allocation10 + $0xb0] sm:$0xff] %v4881_v48  ;;  %2586 = vst [vmem:[#allocation10 + $0xb8] sm:$0xff] %v4888_v16 }
 0x5c7   : > { %2587 = vst [vmem:[#allocation10 + $0xc0] sm:$0xff] %v4900_v19  ;;  %2588 = vst [vmem:[#allocation10 + $0xc8] sm:$0xff] %v4908_v20 }
 0x5c8   : > { %2589 = vst [vmem:[#allocation10 + $0xd0] sm:$0xff] %v5424_v4  ;;  %2590 = vst [vmem:[#allocation10 + $0xd8] sm:$0xff] %v5425_v7 }
 0x5c9   : > { %2591 = vst [vmem:[#allocation10 + $0xe0] sm:$0xff] %v5426_v13  ;;  %2592 = vst [vmem:[#allocation10 + $0xe8] sm:$0xff] %v5427_v17 }
 0x5ca   : > { %2593 = vst [vmem:[#allocation10 + $0xf0] sm:$0xff] %v5428_v34  ;;  %2594 = vst [vmem:[#allocation10 + $0xf8] sm:$0xff] %v5429_v31 }
 0x5cb PF: > { %p3561_p5 = scmp.eq.s32.totalorder %s3962_s24, 2  ;;  %s3899_s21 = smov [#allocation10]  }
 0x5cc   : > { %s2601_s8 = sshll.u32 %s3899_s21, 4  ;;  %s2602_s8 = int_to_ptr.vmem [resolvable:$true] %s2601_s8 }
 0x5cd   : > { %s3771_s16 = scalar_lea.vmem %s2602_s8, 4096  ;;  %p3778_p2 = scmp.lt.s32.totalorder %s2602_s8, %s2602_s8 }
 0x5ce   : > { %p3772_p7 = scmp.ne.s32.totalorder %s2602_s8, %s3771_s16  ;;  %p3779_p9 = scmp.lt.s32.totalorder %s3771_s16, %s3771_s16 }
 0x5d0   : > { %p3773_p0 = pnand %p3772_p7, %p3561_p5  ;;  %p3780_p11 = por %p3779_p9, %p3778_p2 }
 0x5d2   : > { %p3774_p12 = pneg %p3773_p0 }
 0x5d4   : > { %p3781_p13 = pnand %p3780_p11, %p3774_p12 }
 0x5d6   : > { %3784 = shalt.err (!%p3781_p13)
}
 0x5d7   : > { %s3785_s9 = scalar_lea.hbm %s5097_s4, 4096 }
 0x5d8   : > { %p3786_p10 = scmp.ne.s32.totalorder %s5097_s4, %s3785_s9  ;;  %p3791_p1 = scmp.lt.u32.totalorder %s3785_s9, %s5097_s4 }
 0x5da   : > { %p3787_p3 = pnand %p3786_p10, %p3561_p5 }
 0x5dc   : > { %p3788_p6 = pneg %p3787_p3 }
 0x5de   : > { %p3793_p4 = pnand %p3791_p1, %p3788_p6 }
 0x5e0   : > { %3796 = shalt.err (!%p3793_p4)
}
 0x5e1   : > { %s3900_s15 = smov 128   ;;  %s3901_s29 = smov 8  }
 0x5e2   : > { %3535 = dma.vmem_to_hbm [thread:$0]  (%p3561_p5), %s2602_s8, 4096, %s5097_s4, [#allocation5], %s3900_s15, %s3900_s15, %s3901_s29  }
 0x5e3   : > { %s3902_s2 = smov [#allocation11]  }
 0x5e4   : > { %s2614_s27 = sshll.u32 %s3902_s2, 4  ;;  %s2615_s27 = int_to_ptr.vmem [resolvable:$true] %s2614_s27 }
 0x5e5   : > { %s3797_s7 = scalar_lea.vmem %s2615_s27, 4096  ;;  %p3804_p12 = scmp.lt.s32.totalorder %s2615_s27, %s2615_s27 }
 0x5e6   : > { %p3798_p8 = scmp.ne.s32.totalorder %s2615_s27, %s3797_s7  ;;  %p3805_p2 = scmp.lt.s32.totalorder %s3797_s7, %s3797_s7 }
 0x5e8   : > { %p3799_p7 = pnand %p3798_p8, %p3561_p5  ;;  %p3806_p9 = por %p3805_p2, %p3804_p12 }
 0x5ea   : > { %p3800_p0 = pneg %p3799_p7 }
 0x5ec   : > { %p3807_p11 = pnand %p3806_p9, %p3800_p0 }
 0x5ee   : > { %3810 = shalt.err (!%p3807_p11)
}
 0x5ef   : > { %s3811_s12 = scalar_lea.hbm %s5098_s5, 4096 }
 0x5f0   : > { %p3812_p13 = scmp.ne.s32.totalorder %s5098_s5, %s3811_s12  ;;  %p3817_p6 = scmp.lt.u32.totalorder %s3811_s12, %s5098_s5 }
 0x5f2   : > { %p3813_p10 = pnand %p3812_p13, %p3561_p5 }
 0x5f4   : > { %p3814_p3 = pneg %p3813_p10 }
 0x5f6   : > { %p3819_p1 = pnand %p3817_p6, %p3814_p3 }
 0x5f8   : > { %3822 = shalt.err (!%p3819_p1)
}
 0x5f9   : > { %3537 = dma.vmem_to_hbm [thread:$0]  (%p3561_p5), %s2615_s27, 4096, %s5098_s5, [#allocation12], %s3900_s15, %s3900_s15, %s3901_s29  }
 0x5fa   : > { %3860 = dma.done.wait (%p3561_p5), [#allocation5], 4096  }
 0x5fb   : > { %3862 = vsyncadd (%p3561_p5), [#allocation5], 4294963200 }
 0x5fc   : > { %3864 = dma.done.wait (%p3561_p5), [#allocation12], 4096  }
 0x5fd   : > { %3866 = vsyncadd (%p3561_p5), [#allocation12], 4294963200 }
 0x5fe PF: > { %s20_s23 = sadd.s32 1, %s3889_s23   ;;  %s5430_s9 = sld [smem:[#allocation18_spill]] }
 0x5ff   : > { %p17_p4 = scmp.ge.s32.totalorder %s20_s23, 5   ;;  %s5431_s18 = smov %s3873_s19 }
 0x600   : > { %s5432_s19 = smov %s3877_s20  ;;  %s5433_s20 = smov %s4030_s13 }
 0x601   : > { %s5434_s21 = smov %s3885_s22  ;;  %19 = sbr.rel (!%p17_p4) target bundleno = 9 (0x9), region = 142 }
 0x604   : > { %s5435_s22 = smov %s5430_s9 }
 0x608   :  { %2634 = vsyncpa [#allocation4], 1 }
 0x609   :  { %2636 = vsyncpa [#allocation4 + $0x1], 1 }
 0x60a   :  { %2637 = vsyncpa [#allocation7], 1 }
 0x60b   :  { %2638 = vsyncpa [#allocation5], 1 }
 0x60c   :  { %2640 = vsyncpa [#allocation5 + $0x1], 1 }
 0x60d   :  { %2641 = vsyncpa [#allocation12], 1 }

</bundles_post_ra>
